<compile_context>
chip_gen: v7x
topology: tpu7x:2x2x1
jax: 0.10.0
libtpu: 0.0.40
codegen_flags: <defaults>
</compile_context>

<pallas_src>
import jax
import jax.numpy as jnp
from jax.experimental import pallas as pl
from jax.experimental.pallas import tpu as pltpu


def _round_up(x, m):
    return ((x + m - 1) // m) * m


def _link_predictor_kernel(xi_ref, xj_ref,
                           w1_ref, b1_ref,
                           w2_ref, b2_ref,
                           w3_ref, b3_ref,
                           o_ref):
    # Elementwise Hadamard product of the two node embeddings.  Inputs arrive
    # as bf16 (halved HBM traffic); product stays bf16 for the MXU fast path.
    x = xi_ref[...] * xj_ref[...]

    # layer 1: Linear + ReLU (bf16 matmul, f32 accumulate, f32 bias/ReLU)
    h = jnp.dot(x, w1_ref[...], preferred_element_type=jnp.float32) + b1_ref[...]
    h = jnp.maximum(h, 0.0)

    # layer 2: Linear + ReLU
    h = jnp.dot(h.astype(jnp.bfloat16), w2_ref[...],
                preferred_element_type=jnp.float32) + b2_ref[...]
    h = jnp.maximum(h, 0.0)

    # final layer: Linear + sigmoid (Dout = 1; lane-sparse output is fine,
    # output bytes are noise vs. the input stream)
    z = jnp.dot(h.astype(jnp.bfloat16), w3_ref[...],
                preferred_element_type=jnp.float32) + b3_ref[...]
    o_ref[...] = jax.nn.sigmoid(z).astype(o_ref.dtype)


def link_predictor(x_i, x_j, params, *, tile_n=4096):
    """Pallas-backed LinkPredictor forward.

    x_i, x_j : [N, in_channels] float32 (cast to bf16 internally)
    params   : dict with w1 [in,hid], b1 [1,hid], w2 [hid,hid], b2 [1,hid],
               w3 [hid,out], b3 [1,out]  (float32; weights cast to bf16)
    returns  : [N, out_channels] float32 (sigmoid probabilities)
    """
    N, Din = x_i.shape
    Dh = params["w1"].shape[1]
    Dout = params["w3"].shape[1]
    assert tile_n % 16 == 0, "tile_n must be a multiple of 16 (bf16 sublanes)"

    # Stream activations as bf16: the kernel is input-DMA bound on every
    # generation (AI ~ 64 FLOP/B), so halving input bytes is the big lever.
    x_i = x_i.astype(jnp.bfloat16)
    x_j = x_j.astype(jnp.bfloat16)

    # Batch tile: as large as tile_n allows, multiple of 16 rows, no padding.
    # Ragged N is handled by a partial final block (boundary DMAs clamped to
    # the array; garbage tail rows are never written beyond row N).
    tile = min(tile_n, _round_up(max(N, 16), 16))
    grid = (pl.cdiv(N, tile),)

    # Weights go through the MXU in bf16 (f32 accumulate); biases stay f32.
    w1 = params["w1"].astype(jnp.bfloat16)
    w2 = params["w2"].astype(jnp.bfloat16)
    w3 = params["w3"].astype(jnp.bfloat16)
    b1, b2, b3 = params["b1"], params["b2"], params["b3"]

    # Activations tiled along the batch dim (default 2-deep pipelining);
    # weights/biases are grid-resident and single-buffered.
    act_spec = pl.BlockSpec((tile, Din), lambda i: (i, 0))
    out_spec = pl.BlockSpec((tile, Dout), lambda i: (i, 0))

    def resident(shape):
        return pl.BlockSpec(shape, lambda i: (0, 0), pipeline_mode=pl.Buffered(1))

    out = pl.pallas_call(
        _link_predictor_kernel,
        out_shape=jax.ShapeDtypeStruct((N, Dout), jnp.float32),
        grid_spec=pltpu.PrefetchScalarGridSpec(
            num_scalar_prefetch=0,
            grid=grid,
            in_specs=[
                act_spec,                       # x_i  (bf16, tiled)
                act_spec,                       # x_j  (bf16, tiled)
                resident((Din, Dh)),            # w1
                resident((1, Dh)),              # b1
                resident((Dh, Dh)),             # w2
                resident((1, Dh)),              # b2
                resident((Dh, Dout)),           # w3
                resident((1, Dout)),            # b3
            ],
            out_specs=out_spec,
        ),
        compiler_params=pltpu.CompilerParams(
            dimension_semantics=("parallel",),   # megacore shards batch steps on v7x
            vmem_limit_bytes=32 * 1024 * 1024,   # footprint ~6-10 MiB at tile=4096
        ),
    )(x_i, x_j, w1, b1, w2, b2, w3, b3)

    return out


def init_params(key, in_channels, hidden_channels, out_channels):
    """Deterministic PyTorch-Linear-style init (uniform +/- 1/sqrt(fan_in))."""
    ks = jax.random.split(key, 6)

    def lin(kw, kb, fan_in, fan_out):
        bound = 1.0 / jnp.sqrt(fan_in)
        w = jax.random.uniform(kw, (fan_in, fan_out), jnp.float32, -bound, bound)
        b = jax.random.uniform(kb, (1, fan_out), jnp.float32, -bound, bound)
        return w, b

    w1, b1 = lin(ks[0], ks[1], in_channels, hidden_channels)
    w2, b2 = lin(ks[2], ks[3], hidden_channels, hidden_channels)
    w3, b3 = lin(ks[4], ks[5], hidden_channels, out_channels)
    return {"w1": w1, "b1": b1, "w2": w2, "b2": b2, "w3": w3, "b3": b3}


def link_predictor_ref(x_i, x_j, p):
    x = x_i * x_j
    x = jnp.maximum(x @ p["w1"] + p["b1"], 0.0)
    x = jnp.maximum(x @ p["w2"] + p["b2"], 0.0)
    return jax.nn.sigmoid(x @ p["w3"] + p["b3"])


if __name__ == "__main__":
    # Small shapes consistent with the module: num_layers=3, out_channels=1.
    # N is deliberately ragged to exercise the partial-final-block path.
    N = 300            # number of node pairs (edges) being scored
    IN_CH = 128        # in_channels
    HID_CH = 128       # hidden_channels
    OUT_CH = 1         # out_channels

    key = jax.random.PRNGKey(0)
    k_xi, k_xj, k_p = jax.random.split(key, 3)

    x_i = jax.random.normal(k_xi, (N, IN_CH), jnp.float32)
    x_j = jax.random.normal(k_xj, (N, IN_CH), jnp.float32)
    params = init_params(k_p, IN_CH, HID_CH, OUT_CH)

    out = link_predictor(x_i, x_j, params)
    out = jax.block_until_ready(out)

    ref = link_predictor_ref(x_i, x_j, params)
    assert out.shape == (N, OUT_CH)
    # bf16 activations + bf16 matmuls (f32 accumulate) vs f32 reference.
    assert jnp.allclose(out, ref, atol=2.5e-2), "mismatch vs JAX reference"

    print("KERNEL_OK")
</pallas_src>

<mosaic_0001>
module attributes {stable_mosaic.version = 11 : i64} {
  func.func @_link_predictor_kernel(%arg0: i32, %arg1: memref<304x128xbf16, #tpu.memory_space<vmem>>, %arg2: memref<304x128xbf16, #tpu.memory_space<vmem>>, %arg3: memref<128x128xbf16, #tpu.memory_space<vmem>>, %arg4: memref<1x128xf32, #tpu.memory_space<vmem>>, %arg5: memref<128x128xbf16, #tpu.memory_space<vmem>>, %arg6: memref<1x128xf32, #tpu.memory_space<vmem>>, %arg7: memref<128x1xbf16, #tpu.memory_space<vmem>>, %arg8: memref<1x1xf32, #tpu.memory_space<vmem>>, %arg9: memref<304x1xf32, #tpu.memory_space<vmem>>) attributes {dimension_semantics = [#tpu.dimension_semantics<parallel>], iteration_bounds = array<i64: 1>, scalar_prefetch = 0 : i64, scratch_operands = 0 : i64, tpu.core_type = #tpu.core_type<tc>, window_params = [{transform_indices = @transform_0, window_bounds = array<i64: 304, 128>}, {transform_indices = @transform_1, window_bounds = array<i64: 304, 128>}, {pipeline_mode = #tpu.pipeline_mode<synchronous>, transform_indices = @transform_2, window_bounds = array<i64: 128, 128>}, {pipeline_mode = #tpu.pipeline_mode<synchronous>, transform_indices = @transform_3, window_bounds = array<i64: 1, 128>}, {pipeline_mode = #tpu.pipeline_mode<synchronous>, transform_indices = @transform_4, window_bounds = array<i64: 128, 128>}, {pipeline_mode = #tpu.pipeline_mode<synchronous>, transform_indices = @transform_5, window_bounds = array<i64: 1, 128>}, {pipeline_mode = #tpu.pipeline_mode<synchronous>, transform_indices = @transform_6, window_bounds = array<i64: 128, 1>}, {pipeline_mode = #tpu.pipeline_mode<synchronous>, transform_indices = @transform_7, window_bounds = array<i64: 1, 1>}, {transform_indices = @transform_8, window_bounds = array<i64: 304, 1>}]} {
    %c0 = arith.constant 0 : index
    %c0_0 = arith.constant 0 : index
    %0 = vector.load %arg1[%c0, %c0_0] : memref<304x128xbf16, #tpu.memory_space<vmem>>, vector<304x128xbf16>
    %c0_1 = arith.constant 0 : index
    %c0_2 = arith.constant 0 : index
    %1 = vector.load %arg2[%c0_1, %c0_2] : memref<304x128xbf16, #tpu.memory_space<vmem>>, vector<304x128xbf16>
    %2 = arith.mulf %0, %1 : vector<304x128xbf16>
    %c0_3 = arith.constant 0 : index
    %c0_4 = arith.constant 0 : index
    %3 = vector.load %arg3[%c0_3, %c0_4] : memref<128x128xbf16, #tpu.memory_space<vmem>>, vector<128x128xbf16>
    %cst = arith.constant dense<0.000000e+00> : vector<304x128xf32>
    %4 = tpu.matmul %2, %3, %cst {dimension_numbers = #tpu.dot_dimension_numbers<[1], [0], [0], [1], [0, 0, 1, 1], [], []>} : vector<304x128xbf16>, vector<128x128xbf16>, vector<304x128xf32> -> vector<304x128xf32>
    %c0_5 = arith.constant 0 : index
    %c0_6 = arith.constant 0 : index
    %5 = vector.load %arg4[%c0_5, %c0_6] : memref<1x128xf32, #tpu.memory_space<vmem>>, vector<1x128xf32>
    %6 = vector.broadcast %5 : vector<1x128xf32> to vector<304x128xf32>
    %7 = arith.addf %4, %6 : vector<304x128xf32>
    %cst_7 = arith.constant 0.000000e+00 : f32
    %8 = vector.broadcast %cst_7 : f32 to vector<304x128xf32>
    %9 = arith.maximumf %7, %8 : vector<304x128xf32>
    %10 = arith.truncf %9 : vector<304x128xf32> to vector<304x128xbf16>
    %c0_8 = arith.constant 0 : index
    %c0_9 = arith.constant 0 : index
    %11 = vector.load %arg5[%c0_8, %c0_9] : memref<128x128xbf16, #tpu.memory_space<vmem>>, vector<128x128xbf16>
    %cst_10 = arith.constant dense<0.000000e+00> : vector<304x128xf32>
    %12 = tpu.matmul %10, %11, %cst_10 {dimension_numbers = #tpu.dot_dimension_numbers<[1], [0], [0], [1], [0, 0, 1, 1], [], []>} : vector<304x128xbf16>, vector<128x128xbf16>, vector<304x128xf32> -> vector<304x128xf32>
    %c0_11 = arith.constant 0 : index
    %c0_12 = arith.constant 0 : index
    %13 = vector.load %arg6[%c0_11, %c0_12] : memref<1x128xf32, #tpu.memory_space<vmem>>, vector<1x128xf32>
    %14 = vector.broadcast %13 : vector<1x128xf32> to vector<304x128xf32>
    %15 = arith.addf %12, %14 : vector<304x128xf32>
    %cst_13 = arith.constant 0.000000e+00 : f32
    %16 = vector.broadcast %cst_13 : f32 to vector<304x128xf32>
    %17 = arith.maximumf %15, %16 : vector<304x128xf32>
    %18 = arith.truncf %17 : vector<304x128xf32> to vector<304x128xbf16>
    %c0_14 = arith.constant 0 : index
    %c0_15 = arith.constant 0 : index
    %19 = vector.load %arg7[%c0_14, %c0_15] : memref<128x1xbf16, #tpu.memory_space<vmem>>, vector<128x1xbf16>
    %cst_16 = arith.constant dense<0.000000e+00> : vector<304x1xf32>
    %20 = tpu.matmul %18, %19, %cst_16 {dimension_numbers = #tpu.dot_dimension_numbers<[1], [0], [0], [1], [0, 0, 1, 1], [], []>} : vector<304x128xbf16>, vector<128x1xbf16>, vector<304x1xf32> -> vector<304x1xf32>
    %c0_17 = arith.constant 0 : index
    %c0_18 = arith.constant 0 : index
    %21 = vector.load %arg8[%c0_17, %c0_18] : memref<1x1xf32, #tpu.memory_space<vmem>>, vector<1x1xf32>
    %22 = vector.broadcast %21 : vector<1x1xf32> to vector<304x1xf32>
    %23 = arith.addf %20, %22 : vector<304x1xf32>
    %24 = arith.negf %23 : vector<304x1xf32>
    %25 = math.exp %24 : vector<304x1xf32>
    %cst_19 = arith.constant 1.000000e+00 : f32
    %26 = vector.broadcast %cst_19 : f32 to vector<304x1xf32>
    %27 = arith.addf %26, %25 : vector<304x1xf32>
    %28 = arith.divf %26, %27 : vector<304x1xf32>
    %c0_20 = arith.constant 0 : index
    %c0_21 = arith.constant 0 : index
    %29 = vector.load %arg9[%c0_20, %c0_21] : memref<304x1xf32, #tpu.memory_space<vmem>>, vector<304x1xf32>
    tpu.vector_store %arg9[%c0_20, %c0_21], %28 {strides = array<i32>} : memref<304x1xf32, #tpu.memory_space<vmem>>, vector<304x1xf32>,
    return
  }
  func.func @transform_0(%arg0: i32) -> (i32, i32) {
    %c0_i32 = arith.constant 0 : i32
    %c0_i32_0 = arith.constant 0 : i32
    return %arg0, %c0_i32 : i32, i32
  }
  func.func @transform_1(%arg0: i32) -> (i32, i32) {
    %c0_i32 = arith.constant 0 : i32
    %c0_i32_0 = arith.constant 0 : i32
    return %arg0, %c0_i32 : i32, i32
  }
  func.func @transform_2(%arg0: i32) -> (i32, i32) {
    %c0_i32 = arith.constant 0 : i32
    %c0_i32_0 = arith.constant 0 : i32
    %c0_i32_1 = arith.constant 0 : i32
    return %c0_i32, %c0_i32_0 : i32, i32
  }
  func.func @transform_3(%arg0: i32) -> (i32, i32) {
    %c0_i32 = arith.constant 0 : i32
    %c0_i32_0 = arith.constant 0 : i32
    %c0_i32_1 = arith.constant 0 : i32
    return %c0_i32, %c0_i32_0 : i32, i32
  }
  func.func @transform_4(%arg0: i32) -> (i32, i32) {
    %c0_i32 = arith.constant 0 : i32
    %c0_i32_0 = arith.constant 0 : i32
    %c0_i32_1 = arith.constant 0 : i32
    return %c0_i32, %c0_i32_0 : i32, i32
  }
  func.func @transform_5(%arg0: i32) -> (i32, i32) {
    %c0_i32 = arith.constant 0 : i32
    %c0_i32_0 = arith.constant 0 : i32
    %c0_i32_1 = arith.constant 0 : i32
    return %c0_i32, %c0_i32_0 : i32, i32
  }
  func.func @transform_6(%arg0: i32) -> (i32, i32) {
    %c0_i32 = arith.constant 0 : i32
    %c0_i32_0 = arith.constant 0 : i32
    %c0_i32_1 = arith.constant 0 : i32
    return %c0_i32, %c0_i32_0 : i32, i32
  }
  func.func @transform_7(%arg0: i32) -> (i32, i32) {
    %c0_i32 = arith.constant 0 : i32
    %c0_i32_0 = arith.constant 0 : i32
    %c0_i32_1 = arith.constant 0 : i32
    return %c0_i32, %c0_i32_0 : i32, i32
  }
  func.func @transform_8(%arg0: i32) -> (i32, i32) {
    %c0_i32 = arith.constant 0 : i32
    %c0_i32_0 = arith.constant 0 : i32
    return %arg0, %c0_i32 : i32, i32
  }
}

</mosaic_0001>

<bundles_post_ra>
// kernel: tpu_custom_call.1
= control target key start
LH: loop header
LB: loop body
LE: loop exit
PB: predicated region body
PF: predicated region fallthrough
CT: control target
= control target key end

     0   :  { %s2766_s0 = inlined_call_operand.hbm [shape: bf16[300,128], index: 0, kind: input, shape index: {}]   ;;  %s2767_s1 = inlined_call_operand.hbm [shape: bf16[300,128], index: 1, kind: input, shape index: {}]   ;;  %s2768_s2 = inlined_call_operand.vmem [shape: bf16[128,128], index: 2, kind: input, shape index: {}]   ;;  %s2769_s3 = inlined_call_operand.vmem [shape: f32[1,128], index: 3, kind: input, shape index: {}]   ;;  %s2770_s4 = inlined_call_operand.hbm [shape: bf16[128,128], index: 4, kind: input, shape index: {}]   ;;  %s2771_s5 = inlined_call_operand.vmem [shape: f32[1,128], index: 5, kind: input, shape index: {}]   ;;  %s2772_s6 = inlined_call_operand.vmem [shape: bf16[128,1], index: 6, kind: input, shape index: {}]   ;;  %s2773_s7 = inlined_call_operand.<no memory space> [shape: f32[1,1], index: 7, kind: input, shape index: {}]   ;;  %s2774_s8 = inlined_call_operand.vmem [shape: f32[300,1], index: 8, kind: output, shape index: {}]  }
   0x1   :  { %v13_v0 = vstv %s2773_s7 }
   0x2   :  { %14 = vst [vmem:[#allocation2] sm:$0x1] %v13_v0 }
   0x3   :  { %15 = vsyncpa [#allocation4], 0 }
   0x4   :  { %16 = vsyncpa [#allocation6], 0  ;;  %s2166_s29 = smov [#allocation5]   ;;  %s2167_s9 = smov [#allocation3]  }
   0x5   :  { %s34_s30 = sshll.u32 %s2166_s29, 4  ;;  %s22_s10 = sshll.u32 %s2167_s9, 4  ;;  %s35_s30 = int_to_ptr.vmem [resolvable:$true] %s34_s30  ;;  %s2221_s10 = int_to_ptr.vmem [resolvable:$true] %s22_s10 }
   0x6   :  { %s2096_s13 = scalar_lea.hbm %s2767_s1, 2432 }
   0x7   :  { %p2097_p0 = scmp.ne.s32.totalorder %s2767_s1, %s2096_s13  ;;  %p2100_p1 = scmp.lt.u32.totalorder %s2096_s13, %s2767_s1 }
   0x9   :  { %p2102_p2 = pnand %p2100_p1, %p2097_p0 }
   0xb   :  { %2105 = shalt.err (!%p2102_p2)
}
   0xc   :  { %s2106_s17 = scalar_lea.vmem %s35_s30, 2432  ;;  %p2111_p4 = scmp.lt.s32.totalorder %s35_s30, %s35_s30 }
   0xd   :  { %p2107_p3 = scmp.ne.s32.totalorder %s35_s30, %s2106_s17  ;;  %p2112_p5 = scmp.lt.s32.totalorder %s2106_s17, %s2106_s17 }
   0xf   :  { %p2113_p6 = por %p2112_p5, %p2111_p4 }
  0x11   :  { %p2114_p7 = pnand %p2113_p6, %p2107_p3 }
  0x13   :  { %2117 = shalt.err (!%p2114_p7)
}
  0x14   :  { %s2168_s18 = smov 64   ;;  %s2169_s19 = smov 4  }
  0x15   :  { %40 = dma.hbm_to_vmem [thread:$0]  %s2767_s1, 2432, %s35_s30, [#allocation6], %s2168_s18, %s2168_s18, %s2169_s19  }
  0x16   :  { %s2118_s24 = scalar_lea.hbm %s2766_s0, 2432 }
  0x17   :  { %p2119_p8 = scmp.ne.s32.totalorder %s2766_s0, %s2118_s24  ;;  %p2122_p9 = scmp.lt.u32.totalorder %s2118_s24, %s2766_s0 }
  0x19   :  { %p2124_p10 = pnand %p2122_p9, %p2119_p8 }
  0x1b   :  { %2127 = shalt.err (!%p2124_p10)
}
  0x1c   :  { %s2128_s29 = scalar_lea.vmem %s2221_s10, 2432  ;;  %p2133_p12 = scmp.lt.s32.totalorder %s2221_s10, %s2221_s10 }
  0x1d   :  { %p2129_p11 = scmp.ne.s32.totalorder %s2221_s10, %s2128_s29  ;;  %p2134_p13 = scmp.lt.s32.totalorder %s2128_s29, %s2128_s29 }
  0x1f   :  { %p2135_p0 = por %p2134_p13, %p2133_p12 }
  0x21   :  { %p2136_p1 = pnand %p2135_p0, %p2129_p11 }
  0x23   :  { %2139 = shalt.err (!%p2136_p1)
}
  0x24   :  { %28 = dma.hbm_to_vmem [thread:$0]  %s2766_s0, 2432, %s2221_s10, [#allocation4], %s2168_s18, %s2168_s18, %s2169_s19  }
  0x25   :  { %s2170_s9 = smov [#allocation7]   ;;  %s2140_s14 = scalar_lea.hbm %s2770_s4, 1024 }
  0x26   :  { %s50_s11 = sshll.u32 %s2170_s9, 4  ;;  %p2141_p2 = scmp.ne.s32.totalorder %s2770_s4, %s2140_s14  ;;  %s51_s11 = int_to_ptr.vmem [resolvable:$true] %s50_s11 }
  0x27   :  { %p2144_p3 = scmp.lt.u32.totalorder %s2140_s14, %s2770_s4 }
  0x29   :  { %p2146_p4 = pnand %p2144_p3, %p2141_p2 }
  0x2b   :  { %2149 = shalt.err (!%p2146_p4)
}
  0x2c   :  { %s2150_s20 = scalar_lea.vmem %s51_s11, 1024  ;;  %p2155_p6 = scmp.lt.s32.totalorder %s51_s11, %s51_s11 }
  0x2d   :  { %p2151_p5 = scmp.ne.s32.totalorder %s51_s11, %s2150_s20  ;;  %p2156_p7 = scmp.lt.s32.totalorder %s2150_s20, %s2150_s20 }
  0x2f   :  { %p2157_p8 = por %p2156_p7, %p2155_p6 }
  0x31   :  { %p2158_p9 = pnand %p2157_p8, %p2151_p5 }
  0x33   :  { %2161 = shalt.err (!%p2158_p9)
}
  0x34   :  { %56 = dma.hbm_to_vmem [thread:$0]  %s2770_s4, 1024, %s51_s11, [#allocation6], %s2168_s18, %s2168_s18, %s2169_s19  }
  0x35   :  { %2162 = dma.done.wait [#allocation4], 2432  }
  0x36   :  { %2163 = vsyncadd [#allocation4], 4294964864 }
  0x37   :  { %2164 = dma.done.wait [#allocation6], 3456  }
  0x38   :  { %2165 = vsyncadd [#allocation6], 4294963840  ;;  %v2171_v1 = vmov 0.0   ;;  %vm2172_vm0 = vmmov 0   ;;  %v1920_v2 = vld [vmem:[%s2768_s2] sm:$0xff]   ;;  %v1921_v3 = vld [vmem:[%s2768_s2 + $0x8] sm:$0xff]  }
  0x39   :  { %1621 = vmatprep.subr.bf16.mxu0 %v2171_v1  ;;  %1637 = vmatprep.mubr.msk.bf16.mxu0 %vm2172_vm0, %v2171_v1  ;;  %v1922_v4 = vld [vmem:[%s2768_s2 + $0x10] sm:$0xff]   ;;  %v1923_v5 = vld [vmem:[%s2768_s2 + $0x18] sm:$0xff]   ;;  %v1924_v6 = vld [vmem:[%s2768_s2 + $0x20] sm:$0xff]   ;;  %vm1411_vm1 = vcmask 7168  }
  0x3a   :  { %1897 = vmatprep.subr.bf16.mxu1 %v2171_v1  ;;  %1677 = vmatprep.mubr.msk.bf16.mxu1 %vm2172_vm0, %v2171_v1  ;;  %v1925_v7 = vld [vmem:[%s2768_s2 + $0x28] sm:$0xff]   ;;  %v1926_v8 = vld [vmem:[%s2768_s2 + $0x30] sm:$0xff]   ;;  %v73_v9 = vld [vmem:[#allocation3] sm:$0xf] }
  0x3b   :  { %1622 = vmatpush3.bf16.msra.mxu0 %v1920_v2  ;;  %1905 = vmatpush3.bf16.msra.mxu1 %v1920_v2  ;;  %v74_v10 = vld [vmem:[#allocation3 + $0x4] sm:$0xf]  ;;  %v111_v11 = vld [vmem:[#allocation5] sm:$0xf]  ;;  %v112_v12 = vld [vmem:[#allocation5 + $0x4] sm:$0xf] }
  0x3c   :  { %1623 = vmatprep.subr.bf16.mxu0 %v2171_v1  ;;  %1898 = vmatprep.subr.bf16.mxu1 %v2171_v1  ;;  %v93_v13 = vld [vmem:[#allocation3 + $0x50] sm:$0xf]  ;;  %v94_v14 = vld [vmem:[#allocation3 + $0x54] sm:$0xf]  ;;  %v131_v15 = vld [vmem:[#allocation5 + $0x50] sm:$0xf]  ;;  %v149_v17 = vmul.bf16 %v111_v11, %v73_v9  ;;  %v150_v18 = vmul.bf16 %v112_v12, %v74_v10 }
  0x3d   :  { %v132_v16 = vld [vmem:[#allocation5 + $0x54] sm:$0xf]  ;;  %v169_v19 = vmul.bf16 %v131_v15, %v93_v13  ;;  %v1927_v21 = vld [vmem:[%s2768_s2 + $0x38] sm:$0xff]   ;;  %v75_v22 = vld [vmem:[#allocation3 + $0x8] sm:$0xf] }
  0x3e   :  { %v170_v20 = vmul.bf16 %v132_v16, %v94_v14  ;;  %v76_v23 = vld [vmem:[#allocation3 + $0xc] sm:$0xf]  ;;  %v1457_v24 = vcombine.low %v149_v17, %v150_v18  ;;  %v113_v25 = vld [vmem:[#allocation5 + $0x8] sm:$0xf]  ;;  %v114_v26 = vld [vmem:[#allocation5 + $0xc] sm:$0xf] }
  0x3f   :  { %1624 = vmatpush3.bf16.msra.mxu0 %v1921_v3  ;;  %1906 = vmatpush3.bf16.msra.mxu1 %v1921_v3  ;;  %v95_v28 = vld [vmem:[#allocation3 + $0x58] sm:$0xf]  ;;  %v96_v29 = vld [vmem:[#allocation3 + $0x5c] sm:$0xf]  ;;  %v133_v30 = vld [vmem:[#allocation5 + $0x58] sm:$0xf]  ;;  %v151_v32 = vmul.bf16 %v113_v25, %v75_v22  ;;  %v152_v33 = vmul.bf16 %v114_v26, %v76_v23 }
  0x40   :  { %1625 = vmatprep.subr.bf16.mxu0 %v2171_v1  ;;  %1899 = vmatprep.subr.bf16.mxu1 %v2171_v1  ;;  %v1467_v27 = vcombine.low %v169_v19, %v170_v20  ;;  %v134_v31 = vld [vmem:[#allocation5 + $0x5c] sm:$0xf]  ;;  %v171_v34 = vmul.bf16 %v133_v30, %v95_v28  ;;  %v77_v37 = vld [vmem:[#allocation3 + $0x10] sm:$0xf]  ;;  %v115_v38 = vld [vmem:[#allocation5 + $0x10] sm:$0xf] }
  0x41   :  { %v172_v35 = vmul.bf16 %v134_v31, %v96_v29  ;;  %v1928_v36 = vld [vmem:[#allocation7] sm:$0xff]   ;;  %v116_v40 = vld [vmem:[#allocation5 + $0x14] sm:$0xf]  ;;  %v97_v41 = vld [vmem:[#allocation3 + $0x60] sm:$0xf]  ;;  %v1458_v44 = vcombine.low %v151_v32, %v152_v33  ;;  %v153_v48 = vmul.bf16 %v115_v38, %v77_v37 }
  0x42   :  { %v78_v39 = vld [vmem:[#allocation3 + $0x14] sm:$0xf]  ;;  %v98_v42 = vld [vmem:[#allocation3 + $0x64] sm:$0xf]  ;;  %v1929_v43 = vld [vmem:[#allocation7 + $0x8] sm:$0xff]  }
  0x43   :  { %1626 = vmatpush3.bf16.msra.mxu0 %v1922_v4  ;;  %1907 = vmatpush3.bf16.msra.mxu1 %v1922_v4  ;;  %v1468_v45 = vcombine.low %v171_v34, %v172_v35  ;;  %v135_v46 = vld [vmem:[#allocation5 + $0x60] sm:$0xf]  ;;  %v136_v47 = vld [vmem:[#allocation5 + $0x64] sm:$0xf]  ;;  %v1930_v49 = vld [vmem:[#allocation7 + $0x10] sm:$0xff]   ;;  %v154_v50 = vmul.bf16 %v116_v40, %v78_v39 }
  0x44   :  { %1627 = vmatprep.subr.bf16.mxu0 %v2171_v1  ;;  %1900 = vmatprep.subr.bf16.mxu1 %v2171_v1  ;;  %v173_v51 = vmul.bf16 %v135_v46, %v97_v41  ;;  %v174_v52 = vmul.bf16 %v136_v47, %v98_v42  ;;  %v1931_v53 = vld [vmem:[#allocation7 + $0x18] sm:$0xff]   ;;  %v79_v54 = vld [vmem:[#allocation3 + $0x18] sm:$0xf]  ;;  %v117_v55 = vld [vmem:[#allocation5 + $0x18] sm:$0xf] }
  0x45   :  { %v80_v56 = vld [vmem:[#allocation3 + $0x1c] sm:$0xf]  ;;  %v118_v57 = vld [vmem:[#allocation5 + $0x1c] sm:$0xf]  ;;  %v99_v58 = vld [vmem:[#allocation3 + $0x68] sm:$0xf]  ;;  %v1459_v61 = vcombine.low %v153_v48, %v154_v50  ;;  %v155_v0 = vmul.bf16 %v117_v55, %v79_v54 }
  0x46   :  { %v100_v59 = vld [vmem:[#allocation3 + $0x6c] sm:$0xf]  ;;  %v137_v60 = vld [vmem:[#allocation5 + $0x68] sm:$0xf]  ;;  %v1469_v62 = vcombine.low %v173_v51, %v174_v52  ;;  %v138_v63 = vld [vmem:[#allocation5 + $0x6c] sm:$0xf]  ;;  %v156_v3 = vmul.bf16 %v118_v57, %v80_v56 }
  0x47   :  { %1628 = vmatpush3.bf16.msra.mxu0 %v1923_v5  ;;  %1908 = vmatpush3.bf16.msra.mxu1 %v1923_v5  ;;  %v1932_v2 = vld [vmem:[#allocation7 + $0x20] sm:$0xff]   ;;  %v175_v4 = vmul.bf16 %v137_v60, %v99_v58  ;;  %v176_v5 = vmul.bf16 %v138_v63, %v100_v59  ;;  %v119_v10 = vld [vmem:[#allocation5 + $0x20] sm:$0xf]  ;;  %v120_v11 = vld [vmem:[#allocation5 + $0x24] sm:$0xf] }
  0x48   :  { %1629 = vmatprep.subr.bf16.mxu0 %v2171_v1  ;;  %1901 = vmatprep.subr.bf16.mxu1 %v2171_v1  ;;  %v1460_v9 = vcombine.low %v155_v0, %v156_v3  ;;  %v101_v13 = vld [vmem:[#allocation3 + $0x70] sm:$0xf]  ;;  %v102_v14 = vld [vmem:[#allocation3 + $0x74] sm:$0xf]  ;;  %v139_v15 = vld [vmem:[#allocation5 + $0x70] sm:$0xf] }
  0x49   :  { %v1470_v12 = vcombine.low %v175_v4, %v176_v5  ;;  %v140_v16 = vld [vmem:[#allocation5 + $0x74] sm:$0xf]  ;;  %v1934_v18 = vld [vmem:[#allocation7 + $0x30] sm:$0xff]   ;;  %v177_v20 = vmul.bf16 %v139_v15, %v101_v13  ;;  %v83_v22 = vld [vmem:[#allocation3 + $0x28] sm:$0xf] }
  0x4a   :  { %v84_v23 = vld [vmem:[#allocation3 + $0x2c] sm:$0xf]  ;;  %v121_v25 = vld [vmem:[#allocation5 + $0x28] sm:$0xf]  ;;  %v122_v26 = vld [vmem:[#allocation5 + $0x2c] sm:$0xf] }
  0x4b   :  { %1630 = vmatpush3.bf16.msra.mxu0 %v1924_v6  ;;  %1909 = vmatpush3.bf16.msra.mxu1 %v1924_v6  ;;  %v81_v6 = vld [vmem:[#allocation3 + $0x20] sm:$0xf]  ;;  %v103_v28 = vld [vmem:[#allocation3 + $0x78] sm:$0xf]  ;;  %v104_v29 = vld [vmem:[#allocation3 + $0x7c] sm:$0xf]  ;;  %v159_v32 = vmul.bf16 %v121_v25, %v83_v22  ;;  %v160_v33 = vmul.bf16 %v122_v26, %v84_v23 }
  0x4c   :  { %1631 = vmatprep.subr.bf16.mxu0 %v2171_v1  ;;  %1902 = vmatprep.subr.bf16.mxu1 %v2171_v1  ;;  %v157_v17 = vmul.bf16 %v119_v10, %v81_v6  ;;  %v141_v30 = vld [vmem:[#allocation5 + $0x78] sm:$0xf]  ;;  %v142_v31 = vld [vmem:[#allocation5 + $0x7c] sm:$0xf]  ;;  %v123_v39 = vld [vmem:[#allocation5 + $0x30] sm:$0xf] }
  0x4d   :  { %v179_v34 = vmul.bf16 %v141_v30, %v103_v28  ;;  %v180_v35 = vmul.bf16 %v142_v31, %v104_v29  ;;  %v86_v37 = vld [vmem:[#allocation3 + $0x34] sm:$0xf]  ;;  %v1462_v38 = vcombine.low %v159_v32, %v160_v33  ;;  %v124_v40 = vld [vmem:[#allocation5 + $0x34] sm:$0xf]  ;;  %v105_v42 = vld [vmem:[#allocation3 + $0x80] sm:$0xf] }
  0x4e   :  { %v162_v47 = vmul.bf16 %v124_v40, %v86_v37  ;;  %v87_v50 = vld [vmem:[#allocation3 + $0x38] sm:$0xf]  ;;  %v88_v51 = vld [vmem:[#allocation3 + $0x3c] sm:$0xf]  ;;  %v126_v54 = vld [vmem:[#allocation5 + $0x3c] sm:$0xf] }
  0x4f   :  { %1632 = vmatpush3.bf16.msra.mxu0 %v1925_v7  ;;  %1910 = vmatpush3.bf16.msra.mxu1 %v1925_v7  ;;  %v82_v7 = vld [vmem:[#allocation3 + $0x24] sm:$0xf]  ;;  %v1472_v41 = vcombine.low %v179_v34, %v180_v35  ;;  %v107_v56 = vld [vmem:[#allocation3 + $0x88] sm:$0xf]  ;;  %v108_v57 = vld [vmem:[#allocation3 + $0x8c] sm:$0xf] }
  0x50   :  { %1633 = vmatprep.subr.bf16.mxu0 %v2171_v1  ;;  %1903 = vmatprep.subr.bf16.mxu1 %v2171_v1  ;;  %v158_v19 = vmul.bf16 %v120_v11, %v82_v7  ;;  %v145_v58 = vld [vmem:[#allocation5 + $0x88] sm:$0xf]  ;;  %v146_v59 = vld [vmem:[#allocation5 + $0x8c] sm:$0xf]  ;;  %v127_v4 = vld [vmem:[#allocation5 + $0x40] sm:$0xf] }
  0x51   :  { %v184_v63 = vmul.bf16 %v146_v59, %v108_v57  ;;  %v89_v0 = vld [vmem:[#allocation3 + $0x40] sm:$0xf]  ;;  %v128_v5 = vld [vmem:[#allocation5 + $0x44] sm:$0xf]  ;;  %v109_v7 = vld [vmem:[#allocation3 + $0x90] sm:$0xf] }
  0x52   :  { %v148_v10 = vld [vmem:[#allocation5 + $0x94] sm:$0xf]  ;;  %v165_v11 = vmul.bf16 %v127_v4, %v89_v0  ;;  %v2367_v25 = vld [vmem:[%s2769_s3] ss:$0 sm:$0xff] }
  0x53   :  { %1634 = vmatpush3.bf16.msra.mxu0 %v1926_v8  ;;  %1911 = vmatpush3.bf16.msra.mxu1 %v1926_v8  ;;  %v1933_v8 = vld [vmem:[#allocation7 + $0x28] sm:$0xff]  }
  0x54   :  { %1635 = vmatprep.subr.bf16.mxu0 %v2171_v1  ;;  %1904 = vmatprep.subr.bf16.mxu1 %v2171_v1 }
  0x57   :  { %1636 = vmatpush3.bf16.msra.mxu0 %v1927_v21  ;;  %1912 = vmatpush3.bf16.msra.mxu1 %v1927_v21  ;;  %v178_v21 = vmul.bf16 %v140_v16, %v102_v14  ;;  %v91_v16 = vld [vmem:[#allocation3 + $0x48] sm:$0xf] }
  0x58   :  { %1713 = vmatprep.subr.bf16.mxu1 %v2171_v1  ;;  %1805 = vmatprep.subr.bf16.mxu0 %v2171_v1 }
  0x5a   :  { %1638 = vmatmul.mubr.bf16.vlgmr.msra.gmra.mrb[0].mxu0 %v1457_v24  ;;  %1678 = vmatmul.mubr.bf16.vlgmr.msra.gmra.mrb[0].mxu1 %v1467_v27  ;;  %v1461_v24 = vcombine.low %v157_v17, %v158_v19  ;;  %v1471_v27 = vcombine.low %v177_v20, %v178_v21  ;;  %v129_v19 = vld [vmem:[#allocation5 + $0x48] sm:$0xf]  ;;  %v130_v20 = vld [vmem:[#allocation5 + $0x4c] sm:$0xf] }
  0x5b   :  { %1641 = vmatprep.mubr.msk.bf16.mxu0 %vm2172_vm0, %v2171_v1  ;;  %1681 = vmatprep.mubr.msk.bf16.mxu1 %vm2172_vm0, %v2171_v1  ;;  %v167_v21 = vmul.bf16 %v129_v19, %v91_v16 }
  0x5c   :  { %1714 = vmatpush3.bf16.msra.mxu1 %v1928_v36  ;;  %v85_v36 = vld [vmem:[#allocation3 + $0x30] sm:$0xf] }
  0x5d   :  { %1715 = vmatprep.subr.bf16.mxu1 %v2171_v1  ;;  %v161_v46 = vmul.bf16 %v123_v39, %v85_v36 }
  0x5f   :  { %v1463_v52 = vcombine.low %v161_v46, %v162_v47 }
  0x60   :  { %1716 = vmatpush3.bf16.msra.mxu1 %v1929_v43  ;;  %v106_v43 = vld [vmem:[#allocation3 + $0x84] sm:$0xf] }
  0x61   :  { %1717 = vmatprep.subr.bf16.mxu1 %v2171_v1 }
  0x62   :  { %1642 = vmatmul.mubr.bf16.gmra.mrb[4].mxu0 %v1458_v44  ;;  %1682 = vmatmul.mubr.bf16.gmra.mrb[4].mxu1 %v1468_v45  ;;  %v143_v44 = vld [vmem:[#allocation5 + $0x80] sm:$0xf]  ;;  %v144_v45 = vld [vmem:[#allocation5 + $0x84] sm:$0xf] }
  0x63   :  { %1645 = vmatprep.mubr.msk.bf16.mxu0 %vm2172_vm0, %v2171_v1  ;;  %1685 = vmatprep.mubr.msk.bf16.mxu1 %vm2172_vm0, %v2171_v1  ;;  %v181_v48 = vmul.bf16 %v143_v44, %v105_v42 }
  0x64   :  { %1718 = vmatpush3.bf16.msra.mxu1 %v1930_v49  ;;  %v182_v49 = vmul.bf16 %v144_v45, %v106_v43 }
  0x65   :  { %1719 = vmatprep.subr.bf16.mxu1 %v2171_v1 }
  0x66   :  { %v1473_v55 = vcombine.low %v181_v48, %v182_v49 }
  0x68   :  { %1720 = vmatpush3.bf16.msra.mxu1 %v1931_v53  ;;  %v125_v53 = vld [vmem:[#allocation5 + $0x38] sm:$0xf] }
  0x69   :  { %1721 = vmatprep.subr.bf16.mxu1 %v2171_v1  ;;  %v163_v60 = vmul.bf16 %v125_v53, %v87_v50 }
  0x6a   :  { %1646 = vmatmul.mubr.bf16.gmra.mrb[8].mxu0 %v1459_v61  ;;  %1686 = vmatmul.mubr.bf16.gmra.mrb[8].mxu1 %v1469_v62  ;;  %v164_v61 = vmul.bf16 %v126_v54, %v88_v51  ;;  %v183_v62 = vmul.bf16 %v145_v58, %v107_v56 }
  0x6b   :  { %1649 = vmatprep.mubr.msk.bf16.mxu0 %vm2172_vm0, %v2171_v1  ;;  %1689 = vmatprep.mubr.msk.bf16.mxu1 %vm2172_vm0, %v2171_v1 }
  0x6c   :  { %1722 = vmatpush3.bf16.msra.mxu1 %v1932_v2  ;;  %v90_v2 = vld [vmem:[#allocation3 + $0x44] sm:$0xf]  ;;  %v1464_v3 = vcombine.low %v163_v60, %v164_v61  ;;  %v1474_v6 = vcombine.low %v183_v62, %v184_v63 }
  0x6d   :  { %1723 = vmatprep.subr.bf16.mxu1 %v2171_v1 }
  0x70   :  { %1724 = vmatpush3.bf16.msra.mxu1 %v1933_v8  ;;  %v110_v8 = vld [vmem:[#allocation3 + $0x94] sm:$0xf] }
  0x71   :  { %1725 = vmatprep.subr.bf16.mxu1 %v2171_v1  ;;  %v186_v14 = vmul.bf16 %v148_v10, %v110_v8 }
  0x72   :  { %1650 = vmatmul.mubr.bf16.gmra.mrb[12].mxu0 %v1460_v9  ;;  %1690 = vmatmul.mubr.bf16.gmra.mrb[12].mxu1 %v1470_v12  ;;  %v147_v9 = vld [vmem:[#allocation5 + $0x90] sm:$0xf]  ;;  %v166_v12 = vmul.bf16 %v128_v5, %v90_v2  ;;  %v1936_v5 = vld [vmem:[%s2772_s6] sm:$0xff]  }
  0x73   :  { %1653 = vmatprep.mubr.msk.bf16.mxu0 %vm2172_vm0, %v2171_v1  ;;  %1693 = vmatprep.mubr.msk.bf16.mxu1 %vm2172_vm0, %v2171_v1  ;;  %v185_v13 = vmul.bf16 %v147_v9, %v109_v7 }
  0x74   :  { %1726 = vmatpush3.bf16.msra.mxu1 %v1934_v18  ;;  %v1465_v15 = vcombine.low %v165_v11, %v166_v12  ;;  %v92_v18 = vld [vmem:[#allocation3 + $0x4c] sm:$0xf]  ;;  %1806 = vmatpush3.bf16.msra.mxu0 %v1936_v5 }
  0x75   :  { %1727 = vmatprep.subr.bf16.mxu1 %v2171_v1  ;;  %v1475_v17 = vcombine.low %v185_v13, %v186_v14  ;;  %v168_v22 = vmul.bf16 %v130_v20, %v92_v18  ;;  %1807 = vmatprep.subr.bf16.mxu0 %v2171_v1 }
  0x77   :  { %v1466_v23 = vcombine.low %v167_v21, %v168_v22 }
  0x7a   :  { %1654 = vmatmul.mubr.bf16.gmra.mrb[16].mxu0 %v1461_v24  ;;  %1694 = vmatmul.mubr.bf16.gmra.mrb[16].mxu1 %v1471_v27  ;;  %v1935_v24 = vld [vmem:[#allocation7 + $0x38] sm:$0xff]  }
  0x7b   :  { %1657 = vmatprep.mubr.msk.bf16.mxu0 %vm2172_vm0, %v2171_v1  ;;  %1697 = vmatprep.mubr.msk.bf16.mxu1 %vm2172_vm0, %v2171_v1 }
  0x7c   :  { %1728 = vmatpush3.bf16.msra.mxu1 %v1935_v24  ;;  %v1937_v24 = vld [vmem:[%s2772_s6 + $0x8] sm:$0xff]  }
  0x7d   :  { %1808 = vmatpush3.bf16.msra.mxu0 %v1937_v24 }
  0x7e   :  { %1809 = vmatprep.subr.bf16.mxu0 %v2171_v1 }
  0x82   :  { %1658 = vmatmul.mubr.bf16.gmra.mrb[20].mxu0 %v1462_v38  ;;  %1698 = vmatmul.mubr.bf16.gmra.mrb[20].mxu1 %v1472_v41 }
  0x83   :  { %1661 = vmatprep.mubr.msk.bf16.mxu0 %vm2172_vm0, %v2171_v1  ;;  %1701 = vmatprep.mubr.msk.bf16.mxu1 %vm2172_vm0, %v2171_v1 }
  0x8a   :  { %1662 = vmatmul.mubr.bf16.gmra.mrb[24].mxu0 %v1463_v52  ;;  %1702 = vmatmul.mubr.bf16.gmra.mrb[24].mxu1 %v1473_v55 }
  0x8b   :  { %1665 = vmatprep.mubr.msk.bf16.mxu0 %vm2172_vm0, %v2171_v1  ;;  %1705 = vmatprep.mubr.msk.bf16.mxu1 %vm2172_vm0, %v2171_v1 }
  0x92   :  { %1666 = vmatmul.mubr.bf16.gmra.mrb[28].mxu0 %v1464_v3  ;;  %1706 = vmatmul.mubr.bf16.gmra.mrb[28].mxu1 %v1474_v6 }
  0x93   :  { %1669 = vmatprep.mubr.msk.bf16.mxu0 %vm2172_vm0, %v2171_v1  ;;  %1709 = vmatprep.mubr.msk.bf16.mxu1 %vm2172_vm0, %v2171_v1 }
  0x9a   :  { %1670 = vmatmul.mubr.bf16.gmra.mrb[32].mxu0 %v1465_v15  ;;  %1710 = vmatmul.mubr.bf16.gmra.mrb[32].mxu1 %v1475_v17 }
  0x9b   :  { %1673 = vmatprep.mubr.msk.bf16.mxu0 %vm2172_vm0, %v2171_v1  ;;  %1729 = vmatprep.mubr.msk.bf16.mxu1 %vm2172_vm0, %v2171_v1 }
  0xa2   :  { %1674 = vmatmul.mubr.bf16.gmra.mrb[36].mxu0 %v1466_v23 }
  0xa3   :  { %1821 = vmatprep.mubr.msk.bf16.mxu0 %vm2172_vm0, %v2171_v1 }
 0x12d   :  { %v406_v26 = vpop.f32.mrb[0].mxu0  ;;  %v486_v27 = vpop.f32.mrb[0].mxu1 }
 0x12e   :  { %v407_v28 = vadd.f32 %v2367_v25, %v406_v26  ;;  %v1639_v29 = vpop.f32.mrb[1].mxu0  ;;  %v487_v30 = vadd.f32 %v2367_v25, %v486_v27  ;;  %v1679_v31 = vpop.f32.mrb[1].mxu1 }
 0x12f   :  { %v409_v32 = vpop.f32.mrb[2].mxu0  ;;  %v489_v33 = vpop.f32.mrb[2].mxu1 }
 0x130   :  { %v410_v34 = vadd.f32 %v2367_v25, %v409_v32  ;;  %v1640_v35 = vpop.f32.mrb[3].mxu0  ;;  %v577_v36 = vmax.f32 %v487_v30, 0.0  ;;  %v490_v37 = vadd.f32 %v2367_v25, %v489_v33  ;;  %v1680_v38 = vpop.f32.mrb[3].mxu1  ;;  %v557_v39 = vmax.f32 %v407_v28, 0.0  ;;  %v1938_v33 = vld [vmem:[%s2772_s6 + $0x10] sm:$0xff]  }
 0x131   :  { %1810 = vmatpush3.bf16.msra.mxu0 %v1938_v33 }
 0x132   :  { %v558_v40 = vmax.f32 %v410_v34, 0.0  ;;  %v578_v41 = vmax.f32 %v490_v37, 0.0  ;;  %1811 = vmatprep.subr.bf16.mxu0 %v2171_v1 }
 0x134   :  { %v595_v42 = vpack.c.bf16 %v558_v40, %v557_v39  ;;  %v2373_v43 = vpack.c.bf16 %v578_v41, %v577_v36  ;;  %v1939_v39 = vld [vmem:[%s2772_s6 + $0x18] sm:$0xff]  }
 0x135   :  { %v414_v44 = vpop.f32.mrb[4].mxu0  ;;  %v494_v45 = vpop.f32.mrb[4].mxu1  ;;  %1812 = vmatpush3.bf16.msra.mxu0 %v1939_v39 }
 0x136   :  { %v415_v46 = vadd.f32 %v2367_v25, %v414_v44  ;;  %v1643_v47 = vpop.f32.mrb[5].mxu0  ;;  %1730 = vmatmul.mubr.bf16.vlgmr.msra.gmra.mrb[36].mxu1 %v595_v42  ;;  %v495_v48 = vadd.f32 %v2367_v25, %v494_v45  ;;  %v1683_v49 = vpop.f32.mrb[5].mxu1  ;;  %1813 = vmatprep.subr.bf16.mxu0 %v2171_v1 }
 0x137   :  { %v417_v50 = vpop.f32.mrb[6].mxu0  ;;  %1733 = vmatprep.mubr.msk.bf16.mxu1 %vm2172_vm0, %v2171_v1  ;;  %v497_v51 = vpop.f32.mrb[6].mxu1 }
 0x138   :  { %v418_v52 = vadd.f32 %v2367_v25, %v417_v50  ;;  %v1644_v53 = vpop.f32.mrb[7].mxu0  ;;  %v579_v54 = vmax.f32 %v495_v48, 0.0  ;;  %v498_v55 = vadd.f32 %v2367_v25, %v497_v51  ;;  %v1684_v56 = vpop.f32.mrb[7].mxu1  ;;  %v559_v57 = vmax.f32 %v415_v46, 0.0 }
 0x13a   :  { %v560_v58 = vmax.f32 %v418_v52, 0.0  ;;  %v580_v59 = vmax.f32 %v498_v55, 0.0 }
 0x13c   :  { %v596_v60 = vpack.c.bf16 %v560_v58, %v559_v57  ;;  %v2381_v61 = vpack.c.bf16 %v580_v59, %v579_v54  ;;  %v1940_v54 = vld [vmem:[%s2772_s6 + $0x20] sm:$0xff]  }
 0x13d   :  { %v422_v62 = vpop.f32.mrb[8].mxu0  ;;  %v502_v63 = vpop.f32.mrb[8].mxu1  ;;  %1814 = vmatpush3.bf16.msra.mxu0 %v1940_v54 }
 0x13e   :  { %v423_v0 = vadd.f32 %v2367_v25, %v422_v62  ;;  %v1647_v2 = vpop.f32.mrb[9].mxu0  ;;  %1734 = vmatmul.mubr.bf16.gmra.mrb[40].mxu1 %v596_v60  ;;  %v503_v3 = vadd.f32 %v2367_v25, %v502_v63  ;;  %v1687_v4 = vpop.f32.mrb[9].mxu1  ;;  %v1941_v60 = vld [vmem:[%s2772_s6 + $0x28] sm:$0xff]   ;;  %1815 = vmatprep.subr.bf16.mxu0 %v2171_v1 }
 0x13f   :  { %v425_v6 = vpop.f32.mrb[10].mxu0  ;;  %1737 = vmatprep.mubr.msk.bf16.mxu1 %vm2172_vm0, %v2171_v1  ;;  %v505_v7 = vpop.f32.mrb[10].mxu1 }
 0x140   :  { %v426_v8 = vadd.f32 %v2367_v25, %v425_v6  ;;  %v1648_v9 = vpop.f32.mrb[11].mxu0  ;;  %v581_v10 = vmax.f32 %v503_v3, 0.0  ;;  %v506_v11 = vadd.f32 %v2367_v25, %v505_v7  ;;  %v1688_v12 = vpop.f32.mrb[11].mxu1  ;;  %v561_v13 = vmax.f32 %v423_v0, 0.0 }
 0x141   :  { %1816 = vmatpush3.bf16.msra.mxu0 %v1941_v60  ;;  %v1942_v12 = vld [vmem:[%s2772_s6 + $0x30] sm:$0xff]  }
 0x142   :  { %v562_v14 = vmax.f32 %v426_v8, 0.0  ;;  %v582_v15 = vmax.f32 %v506_v11, 0.0  ;;  %1817 = vmatprep.subr.bf16.mxu0 %v2171_v1 }
 0x144   :  { %v597_v16 = vpack.c.bf16 %v562_v14, %v561_v13  ;;  %v2393_v17 = vpack.c.bf16 %v582_v15, %v581_v10 }
 0x145   :  { %v430_v18 = vpop.f32.mrb[12].mxu0  ;;  %v510_v19 = vpop.f32.mrb[12].mxu1  ;;  %1818 = vmatpush3.bf16.msra.mxu0 %v1942_v12 }
 0x146   :  { %v431_v20 = vadd.f32 %v2367_v25, %v430_v18  ;;  %v1651_v21 = vpop.f32.mrb[13].mxu0  ;;  %1738 = vmatmul.mubr.bf16.gmra.mrb[44].mxu1 %v597_v16  ;;  %v511_v22 = vadd.f32 %v2367_v25, %v510_v19  ;;  %v1691_v23 = vpop.f32.mrb[13].mxu1  ;;  %v1943_v19 = vld [vmem:[%s2772_s6 + $0x38] sm:$0xff]   ;;  %1819 = vmatprep.subr.bf16.mxu0 %v2171_v1 }
 0x147   :  { %v433_v26 = vpop.f32.mrb[14].mxu0  ;;  %1741 = vmatprep.mubr.msk.bf16.mxu1 %vm2172_vm0, %v2171_v1  ;;  %v513_v27 = vpop.f32.mrb[14].mxu1 }
 0x148   :  { %v434_v28 = vadd.f32 %v2367_v25, %v433_v26  ;;  %v1652_v29 = vpop.f32.mrb[15].mxu0  ;;  %v583_v30 = vmax.f32 %v511_v22, 0.0  ;;  %v514_v31 = vadd.f32 %v2367_v25, %v513_v27  ;;  %v1692_v32 = vpop.f32.mrb[15].mxu1  ;;  %v563_v34 = vmax.f32 %v431_v20, 0.0 }
 0x149   :  { %1820 = vmatpush3.bf16.msra.mxu0 %v1943_v19 }
 0x14a   :  { %v564_v35 = vmax.f32 %v434_v28, 0.0  ;;  %v584_v36 = vmax.f32 %v514_v31, 0.0 }
 0x14c   :  { %v598_v37 = vpack.c.bf16 %v564_v35, %v563_v34  ;;  %v2408_v38 = vpack.c.bf16 %v584_v36, %v583_v30 }
 0x14d   :  { %v438_v40 = vpop.f32.mrb[16].mxu0  ;;  %v518_v41 = vpop.f32.mrb[16].mxu1 }
 0x14e   :  { %v439_v42 = vadd.f32 %v2367_v25, %v438_v40  ;;  %v1655_v44 = vpop.f32.mrb[17].mxu0  ;;  %1742 = vmatmul.mubr.bf16.gmra.mrb[48].mxu1 %v598_v37  ;;  %v519_v45 = vadd.f32 %v2367_v25, %v518_v41  ;;  %v1695_v46 = vpop.f32.mrb[17].mxu1 }
 0x14f   :  { %v441_v47 = vpop.f32.mrb[18].mxu0  ;;  %1745 = vmatprep.mubr.msk.bf16.mxu1 %vm2172_vm0, %v2171_v1  ;;  %v521_v48 = vpop.f32.mrb[18].mxu1 }
 0x150   :  { %v442_v49 = vadd.f32 %v2367_v25, %v441_v47  ;;  %v1656_v50 = vpop.f32.mrb[19].mxu0  ;;  %v585_v51 = vmax.f32 %v519_v45, 0.0  ;;  %v522_v52 = vadd.f32 %v2367_v25, %v521_v48  ;;  %v1696_v53 = vpop.f32.mrb[19].mxu1  ;;  %v565_v55 = vmax.f32 %v439_v42, 0.0 }
 0x152   :  { %v566_v56 = vmax.f32 %v442_v49, 0.0  ;;  %v586_v57 = vmax.f32 %v522_v52, 0.0 }
 0x154   :  { %v599_v58 = vpack.c.bf16 %v566_v56, %v565_v55  ;;  %v2424_v59 = vpack.c.bf16 %v586_v57, %v585_v51 }
 0x155   :  { %v446_v62 = vpop.f32.mrb[20].mxu0  ;;  %v526_v63 = vpop.f32.mrb[20].mxu1 }
 0x156   :  { %v447_v0 = vadd.f32 %v2367_v25, %v446_v62  ;;  %v1659_v2 = vpop.f32.mrb[21].mxu0  ;;  %1746 = vmatmul.mubr.bf16.gmra.mrb[52].mxu1 %v599_v58  ;;  %v527_v3 = vadd.f32 %v2367_v25, %v526_v63  ;;  %v1699_v4 = vpop.f32.mrb[21].mxu1 }
 0x157   :  { %v449_v5 = vpop.f32.mrb[22].mxu0  ;;  %1749 = vmatprep.mubr.msk.bf16.mxu1 %vm2172_vm0, %v2171_v1  ;;  %v529_v6 = vpop.f32.mrb[22].mxu1 }
 0x158   :  { %v450_v7 = vadd.f32 %v2367_v25, %v449_v5  ;;  %v1660_v8 = vpop.f32.mrb[23].mxu0  ;;  %v587_v9 = vmax.f32 %v527_v3, 0.0  ;;  %v530_v10 = vadd.f32 %v2367_v25, %v529_v6  ;;  %v1700_v11 = vpop.f32.mrb[23].mxu1  ;;  %v567_v13 = vmax.f32 %v447_v0, 0.0 }
 0x15a   :  { %v568_v14 = vmax.f32 %v450_v7, 0.0  ;;  %v588_v15 = vmax.f32 %v530_v10, 0.0 }
 0x15c   :  { %v600_v16 = vpack.c.bf16 %v568_v14, %v567_v13  ;;  %v2440_v18 = vpack.c.bf16 %v588_v15, %v587_v9 }
 0x15d   :  { %v454_v20 = vpop.f32.mrb[24].mxu0  ;;  %v534_v21 = vpop.f32.mrb[24].mxu1 }
 0x15e   :  { %v455_v22 = vadd.f32 %v2367_v25, %v454_v20  ;;  %v1663_v23 = vpop.f32.mrb[25].mxu0  ;;  %1750 = vmatmul.mubr.bf16.gmra.mrb[56].mxu1 %v600_v16  ;;  %v535_v24 = vadd.f32 %v2367_v25, %v534_v21  ;;  %v1703_v26 = vpop.f32.mrb[25].mxu1 }
 0x15f   :  { %v457_v27 = vpop.f32.mrb[26].mxu0  ;;  %1753 = vmatprep.mubr.msk.bf16.mxu1 %vm2172_vm0, %v2171_v1  ;;  %v537_v28 = vpop.f32.mrb[26].mxu1 }
 0x160   :  { %v458_v29 = vadd.f32 %v2367_v25, %v457_v27  ;;  %v1664_v30 = vpop.f32.mrb[27].mxu0  ;;  %v589_v31 = vmax.f32 %v535_v24, 0.0  ;;  %v538_v32 = vadd.f32 %v2367_v25, %v537_v28  ;;  %v1704_v33 = vpop.f32.mrb[27].mxu1  ;;  %v569_v34 = vmax.f32 %v455_v22, 0.0 }
 0x162   :  { %v570_v35 = vmax.f32 %v458_v29, 0.0  ;;  %v590_v36 = vmax.f32 %v538_v32, 0.0 }
 0x164   :  { %v601_v37 = vpack.c.bf16 %v570_v35, %v569_v34  ;;  %v2452_v39 = vpack.c.bf16 %v590_v36, %v589_v31 }
 0x165   :  { %v462_v40 = vpop.f32.mrb[28].mxu0  ;;  %v542_v41 = vpop.f32.mrb[28].mxu1 }
 0x166   :  { %v463_v42 = vadd.f32 %v2367_v25, %v462_v40  ;;  %v1667_v44 = vpop.f32.mrb[29].mxu0  ;;  %1754 = vmatmul.mubr.bf16.gmra.mrb[60].mxu1 %v601_v37  ;;  %v543_v45 = vadd.f32 %v2367_v25, %v542_v41  ;;  %v1707_v46 = vpop.f32.mrb[29].mxu1 }
 0x167   :  { %v465_v47 = vpop.f32.mrb[30].mxu0  ;;  %1757 = vmatprep.mubr.msk.bf16.mxu1 %vm2172_vm0, %v2171_v1  ;;  %v545_v48 = vpop.f32.mrb[30].mxu1 }
 0x168   :  { %v466_v49 = vadd.f32 %v2367_v25, %v465_v47  ;;  %v1668_v50 = vpop.f32.mrb[31].mxu0  ;;  %v591_v51 = vmax.f32 %v543_v45, 0.0  ;;  %v546_v52 = vadd.f32 %v2367_v25, %v545_v48  ;;  %v1708_v53 = vpop.f32.mrb[31].mxu1  ;;  %v571_v54 = vmax.f32 %v463_v42, 0.0 }
 0x16a   :  { %v572_v55 = vmax.f32 %v466_v49, 0.0  ;;  %v592_v56 = vmax.f32 %v546_v52, 0.0 }
 0x16c   :  { %v602_v57 = vpack.c.bf16 %v572_v55, %v571_v54  ;;  %v612_v58 = vpack.c.bf16 %v592_v56, %v591_v51 }
 0x16d   :  { %v470_v60 = vpop.f32.mrb[32].mxu0  ;;  %v550_v62 = vpop.f32.mrb[32].mxu1 }
 0x16e   :  { %v471_v63 = vadd.f32 %v2367_v25, %v470_v60  ;;  %v1671_v0 = vpop.f32.mrb[33].mxu0  ;;  %1758 = vmatmul.mubr.bf16.gmra.mrb[64].mxu1 %v602_v57  ;;  %v551_v2 = vadd.f32 %v2367_v25, %v550_v62  ;;  %v1711_v3 = vpop.f32.mrb[33].mxu1 }
 0x16f   :  { %v473_v4 = vpop.f32.mrb[34].mxu0  ;;  %1761 = vmatprep.mubr.msk.bf16.mxu1 %vm2172_vm0, %v2171_v1  ;;  %v553_v5 = vpop.f32.mrb[34].mxu1 }
 0x170   :  { %v474_v6 = vadd.f32 %v2367_v25, %v473_v4  ;;  %v1672_v7 = vpop.f32.mrb[35].mxu0  ;;  %v593_v8 = vmax.f32 %v551_v2, 0.0  ;;  %v554_v9 = vadd.f32 %v2367_v25, %v553_v5  ;;  %v1712_v10 = vpop.f32.mrb[35].mxu1  ;;  %v573_v11 = vmax.f32 %v471_v63, 0.0 }
 0x172   :  { %v574_v12 = vmax.f32 %v474_v6, 0.0  ;;  %v594_v13 = vmax.f32 %v554_v9, 0.0 }
 0x174   :  { %v603_v14 = vpack.c.bf16 %v574_v12, %v573_v11  ;;  %v613_v15 = vpack.c.bf16 %v594_v13, %v593_v8 }
 0x175   :  { %v478_v16 = vpop.f32.mrb[36].mxu0 }
 0x176   :  { %v479_v19 = vadd.f32 %v2367_v25, %v478_v16  ;;  %v1675_v20 = vpop.f32.mrb[37].mxu0  ;;  %1762 = vmatmul.mubr.bf16.gmra.mrb[68].mxu1 %v603_v14 }
 0x177   :  { %v481_v21 = vpop.f32.mrb[38].mxu0  ;;  %1765 = vmatprep.mubr.msk.bf16.mxu1 %vm2172_vm0, %v2171_v1 }
 0x178   :  { %v482_v22 = vadd.f32 %v2367_v25, %v481_v21  ;;  %v1676_v23 = vpop.f32.mrb[39].mxu0  ;;  %v575_v24 = vmax.f32 %v479_v19, 0.0  ;;  %v2498_v25 = vld [vmem:[%s2771_s5] ss:$0 sm:$0xff] }
 0x17a   :  { %v576_v26 = vmax.f32 %v482_v22, 0.0 }
 0x17c   :  { %v604_v27 = vpack.c.bf16 %v576_v26, %v575_v24 }
 0x17e   :  { %1766 = vmatmul.mubr.bf16.gmra.mrb[72].mxu1 %v604_v27 }
 0x17f   :  { %1769 = vmatprep.mubr.msk.bf16.mxu1 %vm2172_vm0, %v2171_v1 }
 0x186   :  { %1770 = vmatmul.mubr.bf16.gmra.mrb[76].mxu1 %v2373_v43 }
 0x187   :  { %1773 = vmatprep.mubr.msk.bf16.mxu1 %vm2172_vm0, %v2171_v1 }
 0x18e   :  { %1774 = vmatmul.mubr.bf16.gmra.mrb[80].mxu1 %v2381_v61 }
 0x18f   :  { %1777 = vmatprep.mubr.msk.bf16.mxu1 %vm2172_vm0, %v2171_v1 }
 0x196   :  { %1778 = vmatmul.mubr.bf16.gmra.mrb[84].mxu1 %v2393_v17 }
 0x197   :  { %1781 = vmatprep.mubr.msk.bf16.mxu1 %vm2172_vm0, %v2171_v1 }
 0x19e   :  { %1782 = vmatmul.mubr.bf16.gmra.mrb[88].mxu1 %v2408_v38 }
 0x19f   :  { %1785 = vmatprep.mubr.msk.bf16.mxu1 %vm2172_vm0, %v2171_v1 }
 0x1a6   :  { %1786 = vmatmul.mubr.bf16.gmra.mrb[92].mxu1 %v2424_v59 }
 0x1a7   :  { %1789 = vmatprep.mubr.msk.bf16.mxu1 %vm2172_vm0, %v2171_v1 }
 0x1ae   :  { %1790 = vmatmul.mubr.bf16.gmra.mrb[96].mxu1 %v2440_v18 }
 0x1af   :  { %1793 = vmatprep.mubr.msk.bf16.mxu1 %vm2172_vm0, %v2171_v1 }
 0x1b6   :  { %1794 = vmatmul.mubr.bf16.gmra.mrb[100].mxu1 %v2452_v39 }
 0x1b7   :  { %1797 = vmatprep.mubr.msk.bf16.mxu1 %vm2172_vm0, %v2171_v1 }
 0x1be   :  { %1798 = vmatmul.mubr.bf16.gmra.mrb[104].mxu1 %v612_v58 }
 0x1bf   :  { %1801 = vmatprep.mubr.msk.bf16.mxu1 %vm2172_vm0, %v2171_v1 }
 0x1c6   :  { %1802 = vmatmul.mubr.bf16.gmra.mrb[108].mxu1 %v613_v15 }
 0x209   :  { %v719_v43 = vpop.f32.mrb[36].mxu1 }
 0x20a   :  { %v720_v61 = vadd.f32 %v2498_v25, %v719_v43  ;;  %v1731_v17 = vpop.f32.mrb[37].mxu1 }
 0x20b   :  { %v722_v38 = vpop.f32.mrb[38].mxu1 }
 0x20c   :  { %v723_v59 = vadd.f32 %v2498_v25, %v722_v38  ;;  %v1732_v18 = vpop.f32.mrb[39].mxu1  ;;  %v870_v28 = vmax.f32 %v720_v61, 0.0 }
 0x20e   :  { %v871_v29 = vmax.f32 %v723_v59, 0.0 }
 0x210   :  { %v908_v30 = vpack.c.bf16 %v871_v29, %v870_v28 }
 0x211   :  { %v727_v31 = vpop.f32.mrb[40].mxu1 }
 0x212   :  { %v728_v32 = vadd.f32 %v2498_v25, %v727_v31  ;;  %v1735_v33 = vpop.f32.mrb[41].mxu1  ;;  %1822 = vmatmul.mubr.bf16.vlgmr.msra.gmra.mrb[40].mxu0 %v908_v30 }
 0x213   :  { %v730_v34 = vpop.f32.mrb[42].mxu1  ;;  %1825 = vmatprep.mubr.msk.bf16.mxu0 %vm2172_vm0, %v2171_v1 }
 0x214   :  { %v731_v35 = vadd.f32 %v2498_v25, %v730_v34  ;;  %v1736_v36 = vpop.f32.mrb[43].mxu1  ;;  %v872_v37 = vmax.f32 %v728_v32, 0.0 }
 0x216   :  { %v873_v39 = vmax.f32 %v731_v35, 0.0 }
 0x218   :  { %v909_v40 = vpack.c.bf16 %v873_v39, %v872_v37 }
 0x219   :  { %v735_v41 = vpop.f32.mrb[44].mxu1 }
 0x21a   :  { %v736_v42 = vadd.f32 %v2498_v25, %v735_v41  ;;  %v1739_v44 = vpop.f32.mrb[45].mxu1  ;;  %1826 = vmatmul.mubr.bf16.gmra.mrb[44].mxu0 %v909_v40 }
 0x21b   :  { %v738_v45 = vpop.f32.mrb[46].mxu1  ;;  %1829 = vmatprep.mubr.msk.bf16.mxu0 %vm2172_vm0, %v2171_v1 }
 0x21c   :  { %v739_v46 = vadd.f32 %v2498_v25, %v738_v45  ;;  %v1740_v47 = vpop.f32.mrb[47].mxu1  ;;  %v874_v48 = vmax.f32 %v736_v42, 0.0 }
 0x21e   :  { %v875_v49 = vmax.f32 %v739_v46, 0.0 }
 0x220   :  { %v910_v50 = vpack.c.bf16 %v875_v49, %v874_v48 }
 0x221   :  { %v743_v51 = vpop.f32.mrb[48].mxu1 }
 0x222   :  { %v744_v52 = vadd.f32 %v2498_v25, %v743_v51  ;;  %v1743_v53 = vpop.f32.mrb[49].mxu1  ;;  %1830 = vmatmul.mubr.bf16.gmra.mrb[48].mxu0 %v910_v50 }
 0x223   :  { %v746_v54 = vpop.f32.mrb[50].mxu1  ;;  %1833 = vmatprep.mubr.msk.bf16.mxu0 %vm2172_vm0, %v2171_v1 }
 0x224   :  { %v747_v55 = vadd.f32 %v2498_v25, %v746_v54  ;;  %v1744_v56 = vpop.f32.mrb[51].mxu1  ;;  %v876_v57 = vmax.f32 %v744_v52, 0.0 }
 0x226   :  { %v877_v58 = vmax.f32 %v747_v55, 0.0 }
 0x228   :  { %v911_v60 = vpack.c.bf16 %v877_v58, %v876_v57 }
 0x229   :  { %v751_v62 = vpop.f32.mrb[52].mxu1 }
 0x22a   :  { %v752_v63 = vadd.f32 %v2498_v25, %v751_v62  ;;  %v1747_v0 = vpop.f32.mrb[53].mxu1  ;;  %1834 = vmatmul.mubr.bf16.gmra.mrb[52].mxu0 %v911_v60 }
 0x22b   :  { %v754_v2 = vpop.f32.mrb[54].mxu1  ;;  %1837 = vmatprep.mubr.msk.bf16.mxu0 %vm2172_vm0, %v2171_v1 }
 0x22c   :  { %v755_v3 = vadd.f32 %v2498_v25, %v754_v2  ;;  %v1748_v4 = vpop.f32.mrb[55].mxu1  ;;  %v878_v5 = vmax.f32 %v752_v63, 0.0 }
 0x22e   :  { %v879_v6 = vmax.f32 %v755_v3, 0.0 }
 0x230   :  { %v912_v7 = vpack.c.bf16 %v879_v6, %v878_v5 }
 0x231   :  { %v759_v8 = vpop.f32.mrb[56].mxu1 }
 0x232   :  { %v760_v9 = vadd.f32 %v2498_v25, %v759_v8  ;;  %v1751_v10 = vpop.f32.mrb[57].mxu1  ;;  %1838 = vmatmul.mubr.bf16.gmra.mrb[56].mxu0 %v912_v7 }
 0x233   :  { %v762_v11 = vpop.f32.mrb[58].mxu1  ;;  %1841 = vmatprep.mubr.msk.bf16.mxu0 %vm2172_vm0, %v2171_v1 }
 0x234   :  { %v763_v12 = vadd.f32 %v2498_v25, %v762_v11  ;;  %v1752_v13 = vpop.f32.mrb[59].mxu1  ;;  %v880_v14 = vmax.f32 %v760_v9, 0.0 }
 0x236   :  { %v881_v15 = vmax.f32 %v763_v12, 0.0 }
 0x238   :  { %v913_v16 = vpack.c.bf16 %v881_v15, %v880_v14 }
 0x239   :  { %v767_v19 = vpop.f32.mrb[60].mxu1 }
 0x23a   :  { %v768_v20 = vadd.f32 %v2498_v25, %v767_v19  ;;  %v1755_v21 = vpop.f32.mrb[61].mxu1  ;;  %1842 = vmatmul.mubr.bf16.gmra.mrb[60].mxu0 %v913_v16 }
 0x23b   :  { %v770_v22 = vpop.f32.mrb[62].mxu1  ;;  %1845 = vmatprep.mubr.msk.bf16.mxu0 %vm2172_vm0, %v2171_v1 }
 0x23c   :  { %v771_v23 = vadd.f32 %v2498_v25, %v770_v22  ;;  %v1756_v24 = vpop.f32.mrb[63].mxu1  ;;  %v882_v26 = vmax.f32 %v768_v20, 0.0 }
 0x23e   :  { %v883_v27 = vmax.f32 %v771_v23, 0.0 }
 0x240   :  { %v914_v43 = vpack.c.bf16 %v883_v27, %v882_v26 }
 0x241   :  { %v775_v61 = vpop.f32.mrb[64].mxu1 }
 0x242   :  { %v776_v17 = vadd.f32 %v2498_v25, %v775_v61  ;;  %v1759_v38 = vpop.f32.mrb[65].mxu1  ;;  %1846 = vmatmul.mubr.bf16.gmra.mrb[64].mxu0 %v914_v43 }
 0x243   :  { %v778_v59 = vpop.f32.mrb[66].mxu1  ;;  %1849 = vmatprep.mubr.msk.bf16.mxu0 %vm2172_vm0, %v2171_v1 }
 0x244   :  { %v779_v18 = vadd.f32 %v2498_v25, %v778_v59  ;;  %v1760_v28 = vpop.f32.mrb[67].mxu1  ;;  %v884_v29 = vmax.f32 %v776_v17, 0.0 }
 0x246   :  { %v885_v30 = vmax.f32 %v779_v18, 0.0 }
 0x248   :  { %v915_v31 = vpack.c.bf16 %v885_v30, %v884_v29 }
 0x249   :  { %v783_v32 = vpop.f32.mrb[68].mxu1 }
 0x24a   :  { %v784_v33 = vadd.f32 %v2498_v25, %v783_v32  ;;  %v1763_v34 = vpop.f32.mrb[69].mxu1  ;;  %1850 = vmatmul.mubr.bf16.gmra.mrb[68].mxu0 %v915_v31 }
 0x24b   :  { %v786_v35 = vpop.f32.mrb[70].mxu1  ;;  %1853 = vmatprep.mubr.msk.bf16.mxu0 %vm2172_vm0, %v2171_v1 }
 0x24c   :  { %v787_v36 = vadd.f32 %v2498_v25, %v786_v35  ;;  %v1764_v37 = vpop.f32.mrb[71].mxu1  ;;  %v886_v39 = vmax.f32 %v784_v33, 0.0 }
 0x24e   :  { %v887_v40 = vmax.f32 %v787_v36, 0.0 }
 0x250   :  { %v916_v41 = vpack.c.bf16 %v887_v40, %v886_v39 }
 0x251   :  { %v791_v42 = vpop.f32.mrb[72].mxu1 }
 0x252   :  { %v792_v44 = vadd.f32 %v2498_v25, %v791_v42  ;;  %v1767_v45 = vpop.f32.mrb[73].mxu1  ;;  %1854 = vmatmul.mubr.bf16.gmra.mrb[72].mxu0 %v916_v41 }
 0x253   :  { %v794_v46 = vpop.f32.mrb[74].mxu1  ;;  %1857 = vmatprep.mubr.msk.bf16.mxu0 %vm2172_vm0, %v2171_v1 }
 0x254   :  { %v795_v47 = vadd.f32 %v2498_v25, %v794_v46  ;;  %v1768_v48 = vpop.f32.mrb[75].mxu1  ;;  %v888_v49 = vmax.f32 %v792_v44, 0.0 }
 0x256   :  { %v889_v50 = vmax.f32 %v795_v47, 0.0 }
 0x258   :  { %v917_v51 = vpack.c.bf16 %v889_v50, %v888_v49 }
 0x259   :  { %v799_v52 = vpop.f32.mrb[76].mxu1 }
 0x25a   :  { %v800_v53 = vadd.f32 %v2498_v25, %v799_v52  ;;  %v1771_v54 = vpop.f32.mrb[77].mxu1  ;;  %1858 = vmatmul.mubr.bf16.gmra.mrb[76].mxu0 %v917_v51 }
 0x25b   :  { %v802_v55 = vpop.f32.mrb[78].mxu1  ;;  %1861 = vmatprep.mubr.msk.bf16.mxu0 %vm2172_vm0, %v2171_v1 }
 0x25c   :  { %v803_v56 = vadd.f32 %v2498_v25, %v802_v55  ;;  %v1772_v57 = vpop.f32.mrb[79].mxu1  ;;  %v890_v58 = vmax.f32 %v800_v53, 0.0 }
 0x25e   :  { %v891_v60 = vmax.f32 %v803_v56, 0.0 }
 0x260   :  { %v918_v62 = vpack.c.bf16 %v891_v60, %v890_v58 }
 0x261   :  { %v807_v63 = vpop.f32.mrb[80].mxu1 }
 0x262   :  { %v808_v0 = vadd.f32 %v2498_v25, %v807_v63  ;;  %v1775_v2 = vpop.f32.mrb[81].mxu1  ;;  %1862 = vmatmul.mubr.bf16.gmra.mrb[80].mxu0 %v918_v62 }
 0x263   :  { %v810_v3 = vpop.f32.mrb[82].mxu1  ;;  %1865 = vmatprep.mubr.msk.bf16.mxu0 %vm2172_vm0, %v2171_v1 }
 0x264   :  { %v811_v4 = vadd.f32 %v2498_v25, %v810_v3  ;;  %v1776_v5 = vpop.f32.mrb[83].mxu1  ;;  %v892_v6 = vmax.f32 %v808_v0, 0.0 }
 0x266   :  { %v893_v7 = vmax.f32 %v811_v4, 0.0 }
 0x268   :  { %v919_v8 = vpack.c.bf16 %v893_v7, %v892_v6 }
 0x269   :  { %v815_v9 = vpop.f32.mrb[84].mxu1 }
 0x26a   :  { %v816_v10 = vadd.f32 %v2498_v25, %v815_v9  ;;  %v1779_v11 = vpop.f32.mrb[85].mxu1  ;;  %1866 = vmatmul.mubr.bf16.gmra.mrb[84].mxu0 %v919_v8 }
 0x26b   :  { %v818_v12 = vpop.f32.mrb[86].mxu1  ;;  %1869 = vmatprep.mubr.msk.bf16.mxu0 %vm2172_vm0, %v2171_v1 }
 0x26c   :  { %v819_v13 = vadd.f32 %v2498_v25, %v818_v12  ;;  %v1780_v14 = vpop.f32.mrb[87].mxu1  ;;  %v894_v15 = vmax.f32 %v816_v10, 0.0  ;;  %v2574_v10 = vld [vmem:[#allocation2] ss:$0 sm:$0xff] }
 0x26e   :  { %v895_v16 = vmax.f32 %v819_v13, 0.0 }
 0x270   :  { %v920_v19 = vpack.c.bf16 %v895_v16, %v894_v15 }
 0x271   :  { %v823_v20 = vpop.f32.mrb[88].mxu1 }
 0x272   :  { %v824_v21 = vadd.f32 %v2498_v25, %v823_v20  ;;  %v1783_v22 = vpop.f32.mrb[89].mxu1  ;;  %1870 = vmatmul.mubr.bf16.gmra.mrb[88].mxu0 %v920_v19 }
 0x273   :  { %v826_v23 = vpop.f32.mrb[90].mxu1  ;;  %1873 = vmatprep.mubr.msk.bf16.mxu0 %vm2172_vm0, %v2171_v1 }
 0x274   :  { %v827_v24 = vadd.f32 %v2498_v25, %v826_v23  ;;  %v1784_v26 = vpop.f32.mrb[91].mxu1  ;;  %v896_v27 = vmax.f32 %v824_v21, 0.0 }
 0x276   :  { %v897_v43 = vmax.f32 %v827_v24, 0.0 }
 0x278   :  { %v921_v61 = vpack.c.bf16 %v897_v43, %v896_v27 }
 0x279   :  { %v831_v17 = vpop.f32.mrb[92].mxu1 }
 0x27a   :  { %v832_v38 = vadd.f32 %v2498_v25, %v831_v17  ;;  %v1787_v59 = vpop.f32.mrb[93].mxu1  ;;  %1874 = vmatmul.mubr.bf16.gmra.mrb[92].mxu0 %v921_v61 }
 0x27b   :  { %v834_v18 = vpop.f32.mrb[94].mxu1  ;;  %1877 = vmatprep.mubr.msk.bf16.mxu0 %vm2172_vm0, %v2171_v1 }
 0x27c   :  { %v835_v28 = vadd.f32 %v2498_v25, %v834_v18  ;;  %v1788_v29 = vpop.f32.mrb[95].mxu1  ;;  %v898_v30 = vmax.f32 %v832_v38, 0.0 }
 0x27e   :  { %v899_v31 = vmax.f32 %v835_v28, 0.0 }
 0x280   :  { %v922_v32 = vpack.c.bf16 %v899_v31, %v898_v30 }
 0x281   :  { %v839_v33 = vpop.f32.mrb[96].mxu1 }
 0x282   :  { %v840_v34 = vadd.f32 %v2498_v25, %v839_v33  ;;  %v1791_v35 = vpop.f32.mrb[97].mxu1  ;;  %1878 = vmatmul.mubr.bf16.gmra.mrb[96].mxu0 %v922_v32 }
 0x283   :  { %v842_v36 = vpop.f32.mrb[98].mxu1  ;;  %1881 = vmatprep.mubr.msk.bf16.mxu0 %vm2172_vm0, %v2171_v1 }
 0x284   :  { %v843_v37 = vadd.f32 %v2498_v25, %v842_v36  ;;  %v1792_v39 = vpop.f32.mrb[99].mxu1  ;;  %v900_v40 = vmax.f32 %v840_v34, 0.0 }
 0x286   :  { %v901_v41 = vmax.f32 %v843_v37, 0.0 }
 0x288   :  { %v923_v42 = vpack.c.bf16 %v901_v41, %v900_v40 }
 0x289   :  { %v847_v44 = vpop.f32.mrb[100].mxu1 }
 0x28a   :  { %v848_v45 = vadd.f32 %v2498_v25, %v847_v44  ;;  %v1795_v46 = vpop.f32.mrb[101].mxu1  ;;  %1882 = vmatmul.mubr.bf16.gmra.mrb[100].mxu0 %v923_v42 }
 0x28b   :  { %v850_v47 = vpop.f32.mrb[102].mxu1  ;;  %1885 = vmatprep.mubr.msk.bf16.mxu0 %vm2172_vm0, %v2171_v1 }
 0x28c   :  { %v851_v48 = vadd.f32 %v2498_v25, %v850_v47  ;;  %v1796_v49 = vpop.f32.mrb[103].mxu1  ;;  %v902_v50 = vmax.f32 %v848_v45, 0.0 }
 0x28e   :  { %v903_v51 = vmax.f32 %v851_v48, 0.0 }
 0x290   :  { %v924_v52 = vpack.c.bf16 %v903_v51, %v902_v50 }
 0x291   :  { %v855_v53 = vpop.f32.mrb[104].mxu1 }
 0x292   :  { %v856_v54 = vadd.f32 %v2498_v25, %v855_v53  ;;  %v1799_v55 = vpop.f32.mrb[105].mxu1  ;;  %1886 = vmatmul.mubr.bf16.gmra.mrb[104].mxu0 %v924_v52 }
 0x293   :  { %v858_v56 = vpop.f32.mrb[106].mxu1  ;;  %1889 = vmatprep.mubr.msk.bf16.mxu0 %vm2172_vm0, %v2171_v1 }
 0x294   :  { %v859_v57 = vadd.f32 %v2498_v25, %v858_v56  ;;  %v1800_v58 = vpop.f32.mrb[107].mxu1  ;;  %v904_v60 = vmax.f32 %v856_v54, 0.0 }
 0x296   :  { %v905_v62 = vmax.f32 %v859_v57, 0.0 }
 0x298   :  { %v925_v63 = vpack.c.bf16 %v905_v62, %v904_v60 }
 0x299   :  { %v863_v0 = vpop.f32.mrb[108].mxu1 }
 0x29a   :  { %v864_v2 = vadd.f32 %v2498_v25, %v863_v0  ;;  %v1803_v3 = vpop.f32.mrb[109].mxu1  ;;  %1890 = vmatmul.mubr.bf16.gmra.mrb[108].mxu0 %v925_v63 }
 0x29b   :  { %v866_v4 = vpop.f32.mrb[110].mxu1  ;;  %1893 = vmatprep.mubr.msk.bf16.mxu0 %vm2172_vm0, %v2171_v1 }
 0x29c   :  { %v867_v5 = vadd.f32 %v2498_v25, %v866_v4  ;;  %v1804_v6 = vpop.f32.mrb[111].mxu1  ;;  %v906_v7 = vmax.f32 %v864_v2, 0.0 }
 0x29e   :  { %v907_v8 = vmax.f32 %v867_v5, 0.0 }
 0x2a0   :  { %v926_v9 = vpack.c.bf16 %v907_v8, %v906_v7 }
 0x2a2   :  { %1894 = vmatmul.mubr.bf16.gmra.mrb[112].mxu0 %v926_v9 }
 0x2e5   :  { %v1032_v11 = vpop.f32.mrb[40].mxu0 }
 0x2e6   :  { %v1033_v12 = vadd.f32 %v2574_v10, %v1032_v11  ;;  %v1823_v13 = vpop.f32.mrb[41].mxu0 }
 0x2e7   :  { %v1035_v14 = vpop.f32.mrb[42].mxu0 }
 0x2e8   :  { %v1502_v15 = vmul.f32 -1.442695, %v1033_v12  ;;  %v1036_v16 = vadd.f32 %v2574_v10, %v1035_v14  ;;  %v1824_v19 = vpop.f32.mrb[43].mxu0 }
 0x2ea   :  { %1944 = vpow2.f32 %v1502_v15  ;;  %v1503_v1 = vmul.f32 -1.442695, %v1036_v16 }
 0x2ec   :  { %1946 = vpow2.f32 %v1503_v1 }
 0x2ed   :  { %v1040_v25 = vpop.f32.mrb[44].mxu0 }
 0x2ee   :  { %v1041_v20 = vadd.f32 %v2574_v10, %v1040_v25  ;;  %v1827_v21 = vpop.f32.mrb[45].mxu0 }
 0x2ef   :  { %v1043_v22 = vpop.f32.mrb[46].mxu0 }
 0x2f0   :  { %v1504_v23 = vmul.f32 -1.442695, %v1041_v20  ;;  %v1044_v24 = vadd.f32 %v2574_v10, %v1043_v22  ;;  %v1828_v26 = vpop.f32.mrb[47].mxu0 }
 0x2f2   :  { %1948 = vpow2.f32 %v1504_v23  ;;  %v1505_v27 = vmul.f32 -1.442695, %v1044_v24 }
 0x2f4   :  { %v1945_v43 = vpop.eup %1944  ;;  %1950 = vpow2.f32 %v1505_v27 }
 0x2f5   :  { %v1297_v61 = vadd.f32 1.0, %v1945_v43  ;;  %v1048_v17 = vpop.f32.mrb[48].mxu0 }
 0x2f6   :  { %v1947_v38 = vpop.eup %1946  ;;  %v1049_v59 = vadd.f32 %v2574_v10, %v1048_v17  ;;  %v1831_v18 = vpop.f32.mrb[49].mxu0 }
 0x2f7   :  { %1952 = vrcp.f32 %v1297_v61  ;;  %v1298_v28 = vadd.f32 1.0, %v1947_v38  ;;  %v1051_v29 = vpop.f32.mrb[50].mxu0 }
 0x2f8   :  { %v1506_v30 = vmul.f32 -1.442695, %v1049_v59  ;;  %v1052_v31 = vadd.f32 %v2574_v10, %v1051_v29  ;;  %v1832_v32 = vpop.f32.mrb[51].mxu0 }
 0x2f9   :  { %1954 = vrcp.f32 %v1298_v28 }
 0x2fa   :  { %1956 = vpow2.f32 %v1506_v30  ;;  %v1507_v33 = vmul.f32 -1.442695, %v1052_v31 }
 0x2fc   :  { %v1949_v34 = vpop.eup %1948  ;;  %1958 = vpow2.f32 %v1507_v33 }
 0x2fd   :  { %v1299_v35 = vadd.f32 1.0, %v1949_v34  ;;  %v1056_v36 = vpop.f32.mrb[52].mxu0 }
 0x2fe   :  { %v1951_v37 = vpop.eup %1950  ;;  %v1057_v39 = vadd.f32 %v2574_v10, %v1056_v36  ;;  %v1835_v40 = vpop.f32.mrb[53].mxu0 }
 0x2ff   :  { %1960 = vrcp.f32 %v1299_v35  ;;  %v1300_v41 = vadd.f32 1.0, %v1951_v37  ;;  %v1059_v42 = vpop.f32.mrb[54].mxu0 }
 0x300   :  { %v1508_v44 = vmul.f32 -1.442695, %v1057_v39  ;;  %v1060_v45 = vadd.f32 %v2574_v10, %v1059_v42  ;;  %v1836_v46 = vpop.f32.mrb[55].mxu0 }
 0x301   :  { %v1953_v47 = vpop.eup %1952  ;;  %1962 = vrcp.f32 %v1300_v41 }
 0x302   :  { %1412 = vst.msk [vmem:[%s2774_s8] sm:$0xff] %vm1411_vm1, %v1953_v47  ;;  %1964 = vpow2.f32 %v1508_v44  ;;  %v1509_v48 = vmul.f32 -1.442695, %v1060_v45 }
 0x303   :  { %v1955_v49 = vpop.eup %1954 }
 0x304   :  { %v1957_v50 = vpop.eup %1956  ;;  %1413 = vst.msk [vmem:[%s2774_s8 + $0x8] sm:$0xff] %vm1411_vm1, %v1955_v49  ;;  %1966 = vpow2.f32 %v1509_v48 }
 0x305   :  { %v1301_v51 = vadd.f32 1.0, %v1957_v50  ;;  %v1064_v52 = vpop.f32.mrb[56].mxu0 }
 0x306   :  { %v1959_v53 = vpop.eup %1958  ;;  %v1065_v54 = vadd.f32 %v2574_v10, %v1064_v52  ;;  %v1839_v55 = vpop.f32.mrb[57].mxu0 }
 0x307   :  { %1968 = vrcp.f32 %v1301_v51  ;;  %v1302_v56 = vadd.f32 1.0, %v1959_v53  ;;  %v1067_v57 = vpop.f32.mrb[58].mxu0 }
 0x308   :  { %v1510_v58 = vmul.f32 -1.442695, %v1065_v54  ;;  %v1068_v60 = vadd.f32 %v2574_v10, %v1067_v57  ;;  %v1840_v62 = vpop.f32.mrb[59].mxu0 }
 0x309   :  { %v1961_v63 = vpop.eup %1960  ;;  %1970 = vrcp.f32 %v1302_v56 }
 0x30a   :  { %1414 = vst.msk [vmem:[%s2774_s8 + $0x10] sm:$0xff] %vm1411_vm1, %v1961_v63  ;;  %1972 = vpow2.f32 %v1510_v58  ;;  %v1511_v0 = vmul.f32 -1.442695, %v1068_v60 }
 0x30b   :  { %v1963_v2 = vpop.eup %1962 }
 0x30c   :  { %v1965_v3 = vpop.eup %1964  ;;  %1415 = vst.msk [vmem:[%s2774_s8 + $0x18] sm:$0xff] %vm1411_vm1, %v1963_v2  ;;  %1974 = vpow2.f32 %v1511_v0 }
 0x30d   :  { %v1303_v4 = vadd.f32 1.0, %v1965_v3  ;;  %v1072_v5 = vpop.f32.mrb[60].mxu0 }
 0x30e   :  { %v1967_v6 = vpop.eup %1966  ;;  %v1073_v7 = vadd.f32 %v2574_v10, %v1072_v5  ;;  %v1843_v8 = vpop.f32.mrb[61].mxu0 }
 0x30f   :  { %1976 = vrcp.f32 %v1303_v4  ;;  %v1304_v9 = vadd.f32 1.0, %v1967_v6  ;;  %v1075_v11 = vpop.f32.mrb[62].mxu0 }
 0x310   :  { %v1512_v12 = vmul.f32 -1.442695, %v1073_v7  ;;  %v1076_v13 = vadd.f32 %v2574_v10, %v1075_v11  ;;  %v1844_v14 = vpop.f32.mrb[63].mxu0 }
 0x311   :  { %v1969_v15 = vpop.eup %1968  ;;  %1978 = vrcp.f32 %v1304_v9 }
 0x312   :  { %1416 = vst.msk [vmem:[%s2774_s8 + $0x20] sm:$0xff] %vm1411_vm1, %v1969_v15  ;;  %1980 = vpow2.f32 %v1512_v12  ;;  %v1513_v16 = vmul.f32 -1.442695, %v1076_v13 }
 0x313   :  { %v1971_v19 = vpop.eup %1970 }
 0x314   :  { %v1973_v1 = vpop.eup %1972  ;;  %1417 = vst.msk [vmem:[%s2774_s8 + $0x28] sm:$0xff] %vm1411_vm1, %v1971_v19  ;;  %1982 = vpow2.f32 %v1513_v16 }
 0x315   :  { %v1305_v25 = vadd.f32 1.0, %v1973_v1  ;;  %v1080_v20 = vpop.f32.mrb[64].mxu0 }
 0x316   :  { %v1975_v21 = vpop.eup %1974  ;;  %v1081_v22 = vadd.f32 %v2574_v10, %v1080_v20  ;;  %v1847_v23 = vpop.f32.mrb[65].mxu0 }
 0x317   :  { %1984 = vrcp.f32 %v1305_v25  ;;  %v1306_v24 = vadd.f32 1.0, %v1975_v21  ;;  %v1083_v26 = vpop.f32.mrb[66].mxu0 }
 0x318   :  { %v1514_v27 = vmul.f32 -1.442695, %v1081_v22  ;;  %v1084_v43 = vadd.f32 %v2574_v10, %v1083_v26  ;;  %v1848_v61 = vpop.f32.mrb[67].mxu0 }
 0x319   :  { %v1977_v17 = vpop.eup %1976  ;;  %1986 = vrcp.f32 %v1306_v24 }
 0x31a   :  { %1418 = vst.msk [vmem:[%s2774_s8 + $0x30] sm:$0xff] %vm1411_vm1, %v1977_v17  ;;  %1988 = vpow2.f32 %v1514_v27  ;;  %v1515_v38 = vmul.f32 -1.442695, %v1084_v43 }
 0x31b   :  { %v1979_v59 = vpop.eup %1978 }
 0x31c   :  { %v1981_v18 = vpop.eup %1980  ;;  %1419 = vst.msk [vmem:[%s2774_s8 + $0x38] sm:$0xff] %vm1411_vm1, %v1979_v59  ;;  %1990 = vpow2.f32 %v1515_v38 }
 0x31d   :  { %v1307_v28 = vadd.f32 1.0, %v1981_v18  ;;  %v1088_v29 = vpop.f32.mrb[68].mxu0 }
 0x31e   :  { %v1983_v30 = vpop.eup %1982  ;;  %v1089_v31 = vadd.f32 %v2574_v10, %v1088_v29  ;;  %v1851_v32 = vpop.f32.mrb[69].mxu0 }
 0x31f   :  { %1992 = vrcp.f32 %v1307_v28  ;;  %v1308_v33 = vadd.f32 1.0, %v1983_v30  ;;  %v1091_v34 = vpop.f32.mrb[70].mxu0 }
 0x320   :  { %v1516_v35 = vmul.f32 -1.442695, %v1089_v31  ;;  %v1092_v36 = vadd.f32 %v2574_v10, %v1091_v34  ;;  %v1852_v37 = vpop.f32.mrb[71].mxu0 }
 0x321   :  { %v1985_v39 = vpop.eup %1984  ;;  %1994 = vrcp.f32 %v1308_v33 }
 0x322   :  { %1420 = vst.msk [vmem:[%s2774_s8 + $0x40] sm:$0xff] %vm1411_vm1, %v1985_v39  ;;  %1996 = vpow2.f32 %v1516_v35  ;;  %v1517_v40 = vmul.f32 -1.442695, %v1092_v36 }
 0x323   :  { %v1987_v41 = vpop.eup %1986 }
 0x324   :  { %v1989_v42 = vpop.eup %1988  ;;  %1421 = vst.msk [vmem:[%s2774_s8 + $0x48] sm:$0xff] %vm1411_vm1, %v1987_v41  ;;  %1998 = vpow2.f32 %v1517_v40 }
 0x325   :  { %v1309_v44 = vadd.f32 1.0, %v1989_v42  ;;  %v1096_v45 = vpop.f32.mrb[72].mxu0 }
 0x326   :  { %v1991_v46 = vpop.eup %1990  ;;  %v1097_v47 = vadd.f32 %v2574_v10, %v1096_v45  ;;  %v1855_v48 = vpop.f32.mrb[73].mxu0 }
 0x327   :  { %2000 = vrcp.f32 %v1309_v44  ;;  %v1310_v49 = vadd.f32 1.0, %v1991_v46  ;;  %v1099_v50 = vpop.f32.mrb[74].mxu0 }
 0x328   :  { %v1518_v51 = vmul.f32 -1.442695, %v1097_v47  ;;  %v1100_v52 = vadd.f32 %v2574_v10, %v1099_v50  ;;  %v1856_v53 = vpop.f32.mrb[75].mxu0 }
 0x329   :  { %v1993_v54 = vpop.eup %1992  ;;  %2002 = vrcp.f32 %v1310_v49 }
 0x32a   :  { %1422 = vst.msk [vmem:[%s2774_s8 + $0x50] sm:$0xff] %vm1411_vm1, %v1993_v54  ;;  %2004 = vpow2.f32 %v1518_v51  ;;  %v1519_v55 = vmul.f32 -1.442695, %v1100_v52 }
 0x32b   :  { %v1995_v56 = vpop.eup %1994 }
 0x32c   :  { %v1997_v57 = vpop.eup %1996  ;;  %1423 = vst.msk [vmem:[%s2774_s8 + $0x58] sm:$0xff] %vm1411_vm1, %v1995_v56  ;;  %2006 = vpow2.f32 %v1519_v55 }
 0x32d   :  { %v1311_v58 = vadd.f32 1.0, %v1997_v57  ;;  %v1104_v60 = vpop.f32.mrb[76].mxu0 }
 0x32e   :  { %v1999_v62 = vpop.eup %1998  ;;  %v1105_v63 = vadd.f32 %v2574_v10, %v1104_v60  ;;  %v1859_v0 = vpop.f32.mrb[77].mxu0 }
 0x32f   :  { %2008 = vrcp.f32 %v1311_v58  ;;  %v1312_v2 = vadd.f32 1.0, %v1999_v62  ;;  %v1107_v3 = vpop.f32.mrb[78].mxu0 }
 0x330   :  { %v1520_v4 = vmul.f32 -1.442695, %v1105_v63  ;;  %v1108_v5 = vadd.f32 %v2574_v10, %v1107_v3  ;;  %v1860_v6 = vpop.f32.mrb[79].mxu0 }
 0x331   :  { %v2001_v7 = vpop.eup %2000  ;;  %2010 = vrcp.f32 %v1312_v2 }
 0x332   :  { %1424 = vst.msk [vmem:[%s2774_s8 + $0x60] sm:$0xff] %vm1411_vm1, %v2001_v7  ;;  %2012 = vpow2.f32 %v1520_v4  ;;  %v1521_v8 = vmul.f32 -1.442695, %v1108_v5 }
 0x333   :  { %v2003_v9 = vpop.eup %2002 }
 0x334   :  { %v2005_v11 = vpop.eup %2004  ;;  %1425 = vst.msk [vmem:[%s2774_s8 + $0x68] sm:$0xff] %vm1411_vm1, %v2003_v9  ;;  %2014 = vpow2.f32 %v1521_v8 }
 0x335   :  { %v1313_v12 = vadd.f32 1.0, %v2005_v11  ;;  %v1112_v13 = vpop.f32.mrb[80].mxu0 }
 0x336   :  { %v2007_v14 = vpop.eup %2006  ;;  %v1113_v15 = vadd.f32 %v2574_v10, %v1112_v13  ;;  %v1863_v16 = vpop.f32.mrb[81].mxu0 }
 0x337   :  { %2016 = vrcp.f32 %v1313_v12  ;;  %v1314_v19 = vadd.f32 1.0, %v2007_v14  ;;  %v1115_v1 = vpop.f32.mrb[82].mxu0 }
 0x338   :  { %v1522_v25 = vmul.f32 -1.442695, %v1113_v15  ;;  %v1116_v20 = vadd.f32 %v2574_v10, %v1115_v1  ;;  %v1864_v21 = vpop.f32.mrb[83].mxu0 }
 0x339   :  { %v2009_v22 = vpop.eup %2008  ;;  %2018 = vrcp.f32 %v1314_v19 }
 0x33a   :  { %1426 = vst.msk [vmem:[%s2774_s8 + $0x70] sm:$0xff] %vm1411_vm1, %v2009_v22  ;;  %2020 = vpow2.f32 %v1522_v25  ;;  %v1523_v23 = vmul.f32 -1.442695, %v1116_v20 }
 0x33b   :  { %v2011_v24 = vpop.eup %2010 }
 0x33c   :  { %v2013_v26 = vpop.eup %2012  ;;  %1427 = vst.msk [vmem:[%s2774_s8 + $0x78] sm:$0xff] %vm1411_vm1, %v2011_v24  ;;  %2022 = vpow2.f32 %v1523_v23 }
 0x33d   :  { %v1315_v27 = vadd.f32 1.0, %v2013_v26  ;;  %v1120_v43 = vpop.f32.mrb[84].mxu0 }
 0x33e   :  { %v2015_v61 = vpop.eup %2014  ;;  %v1121_v17 = vadd.f32 %v2574_v10, %v1120_v43  ;;  %v1867_v38 = vpop.f32.mrb[85].mxu0 }
 0x33f   :  { %2024 = vrcp.f32 %v1315_v27  ;;  %v1316_v59 = vadd.f32 1.0, %v2015_v61  ;;  %v1123_v18 = vpop.f32.mrb[86].mxu0 }
 0x340   :  { %v1524_v28 = vmul.f32 -1.442695, %v1121_v17  ;;  %v1124_v29 = vadd.f32 %v2574_v10, %v1123_v18  ;;  %v1868_v30 = vpop.f32.mrb[87].mxu0 }
 0x341   :  { %v2017_v31 = vpop.eup %2016  ;;  %2026 = vrcp.f32 %v1316_v59 }
 0x342   :  { %1428 = vst.msk [vmem:[%s2774_s8 + $0x80] sm:$0xff] %vm1411_vm1, %v2017_v31  ;;  %2028 = vpow2.f32 %v1524_v28  ;;  %v1525_v32 = vmul.f32 -1.442695, %v1124_v29 }
 0x343   :  { %v2019_v33 = vpop.eup %2018 }
 0x344   :  { %v2021_v34 = vpop.eup %2020  ;;  %1429 = vst.msk [vmem:[%s2774_s8 + $0x88] sm:$0xff] %vm1411_vm1, %v2019_v33  ;;  %2030 = vpow2.f32 %v1525_v32 }
 0x345   :  { %v1317_v35 = vadd.f32 1.0, %v2021_v34  ;;  %v1128_v36 = vpop.f32.mrb[88].mxu0 }
 0x346   :  { %v2023_v37 = vpop.eup %2022  ;;  %v1129_v39 = vadd.f32 %v2574_v10, %v1128_v36  ;;  %v1871_v40 = vpop.f32.mrb[89].mxu0 }
 0x347   :  { %2032 = vrcp.f32 %v1317_v35  ;;  %v1318_v41 = vadd.f32 1.0, %v2023_v37  ;;  %v1131_v42 = vpop.f32.mrb[90].mxu0 }
 0x348   :  { %v1526_v44 = vmul.f32 -1.442695, %v1129_v39  ;;  %v1132_v45 = vadd.f32 %v2574_v10, %v1131_v42  ;;  %v1872_v46 = vpop.f32.mrb[91].mxu0 }
 0x349   :  { %v2025_v47 = vpop.eup %2024  ;;  %2034 = vrcp.f32 %v1318_v41 }
 0x34a   :  { %1430 = vst.msk [vmem:[%s2774_s8 + $0x90] sm:$0xff] %vm1411_vm1, %v2025_v47  ;;  %2036 = vpow2.f32 %v1526_v44  ;;  %v1527_v48 = vmul.f32 -1.442695, %v1132_v45 }
 0x34b   :  { %v2027_v49 = vpop.eup %2026 }
 0x34c   :  { %v2029_v50 = vpop.eup %2028  ;;  %1431 = vst.msk [vmem:[%s2774_s8 + $0x98] sm:$0xff] %vm1411_vm1, %v2027_v49  ;;  %2038 = vpow2.f32 %v1527_v48 }
 0x34d   :  { %v1319_v51 = vadd.f32 1.0, %v2029_v50  ;;  %v1136_v52 = vpop.f32.mrb[92].mxu0 }
 0x34e   :  { %v2031_v53 = vpop.eup %2030  ;;  %v1137_v54 = vadd.f32 %v2574_v10, %v1136_v52  ;;  %v1875_v55 = vpop.f32.mrb[93].mxu0 }
 0x34f   :  { %2040 = vrcp.f32 %v1319_v51  ;;  %v1320_v56 = vadd.f32 1.0, %v2031_v53  ;;  %v1139_v57 = vpop.f32.mrb[94].mxu0 }
 0x350   :  { %v1528_v58 = vmul.f32 -1.442695, %v1137_v54  ;;  %v1140_v60 = vadd.f32 %v2574_v10, %v1139_v57  ;;  %v1876_v62 = vpop.f32.mrb[95].mxu0 }
 0x351   :  { %v2033_v63 = vpop.eup %2032  ;;  %2042 = vrcp.f32 %v1320_v56 }
 0x352   :  { %1432 = vst.msk [vmem:[%s2774_s8 + $0xa0] sm:$0xff] %vm1411_vm1, %v2033_v63  ;;  %2044 = vpow2.f32 %v1528_v58  ;;  %v1529_v0 = vmul.f32 -1.442695, %v1140_v60 }
 0x353   :  { %v2035_v2 = vpop.eup %2034 }
 0x354   :  { %v2037_v3 = vpop.eup %2036  ;;  %1433 = vst.msk [vmem:[%s2774_s8 + $0xa8] sm:$0xff] %vm1411_vm1, %v2035_v2  ;;  %2046 = vpow2.f32 %v1529_v0 }
 0x355   :  { %v1321_v4 = vadd.f32 1.0, %v2037_v3  ;;  %v1144_v5 = vpop.f32.mrb[96].mxu0 }
 0x356   :  { %v2039_v6 = vpop.eup %2038  ;;  %v1145_v7 = vadd.f32 %v2574_v10, %v1144_v5  ;;  %v1879_v8 = vpop.f32.mrb[97].mxu0 }
 0x357   :  { %2048 = vrcp.f32 %v1321_v4  ;;  %v1322_v9 = vadd.f32 1.0, %v2039_v6  ;;  %v1147_v11 = vpop.f32.mrb[98].mxu0 }
 0x358   :  { %v1530_v12 = vmul.f32 -1.442695, %v1145_v7  ;;  %v1148_v13 = vadd.f32 %v2574_v10, %v1147_v11  ;;  %v1880_v14 = vpop.f32.mrb[99].mxu0 }
 0x359   :  { %v2041_v15 = vpop.eup %2040  ;;  %2050 = vrcp.f32 %v1322_v9 }
 0x35a   :  { %1434 = vst.msk [vmem:[%s2774_s8 + $0xb0] sm:$0xff] %vm1411_vm1, %v2041_v15  ;;  %2052 = vpow2.f32 %v1530_v12  ;;  %v1531_v16 = vmul.f32 -1.442695, %v1148_v13 }
 0x35b   :  { %v2043_v19 = vpop.eup %2042 }
 0x35c   :  { %v2045_v1 = vpop.eup %2044  ;;  %1435 = vst.msk [vmem:[%s2774_s8 + $0xb8] sm:$0xff] %vm1411_vm1, %v2043_v19  ;;  %2054 = vpow2.f32 %v1531_v16 }
 0x35d   :  { %v1323_v25 = vadd.f32 1.0, %v2045_v1  ;;  %v1152_v20 = vpop.f32.mrb[100].mxu0 }
 0x35e   :  { %v2047_v21 = vpop.eup %2046  ;;  %v1153_v22 = vadd.f32 %v2574_v10, %v1152_v20  ;;  %v1883_v23 = vpop.f32.mrb[101].mxu0 }
 0x35f   :  { %2056 = vrcp.f32 %v1323_v25  ;;  %v1324_v24 = vadd.f32 1.0, %v2047_v21  ;;  %v1155_v26 = vpop.f32.mrb[102].mxu0 }
 0x360   :  { %v1532_v27 = vmul.f32 -1.442695, %v1153_v22  ;;  %v1156_v43 = vadd.f32 %v2574_v10, %v1155_v26  ;;  %v1884_v61 = vpop.f32.mrb[103].mxu0 }
 0x361   :  { %v2049_v17 = vpop.eup %2048  ;;  %2058 = vrcp.f32 %v1324_v24 }
 0x362   :  { %1436 = vst.msk [vmem:[%s2774_s8 + $0xc0] sm:$0xff] %vm1411_vm1, %v2049_v17  ;;  %2060 = vpow2.f32 %v1532_v27  ;;  %v1533_v38 = vmul.f32 -1.442695, %v1156_v43 }
 0x363   :  { %v2051_v59 = vpop.eup %2050 }
 0x364   :  { %v2053_v18 = vpop.eup %2052  ;;  %1437 = vst.msk [vmem:[%s2774_s8 + $0xc8] sm:$0xff] %vm1411_vm1, %v2051_v59  ;;  %2062 = vpow2.f32 %v1533_v38 }
 0x365   :  { %v1325_v28 = vadd.f32 1.0, %v2053_v18  ;;  %v1160_v29 = vpop.f32.mrb[104].mxu0 }
 0x366   :  { %v2055_v30 = vpop.eup %2054  ;;  %v1161_v31 = vadd.f32 %v2574_v10, %v1160_v29  ;;  %v1887_v32 = vpop.f32.mrb[105].mxu0 }
 0x367   :  { %2064 = vrcp.f32 %v1325_v28  ;;  %v1326_v33 = vadd.f32 1.0, %v2055_v30  ;;  %v1163_v34 = vpop.f32.mrb[106].mxu0 }
 0x368   :  { %v1534_v35 = vmul.f32 -1.442695, %v1161_v31  ;;  %v1164_v36 = vadd.f32 %v2574_v10, %v1163_v34  ;;  %v1888_v37 = vpop.f32.mrb[107].mxu0 }
 0x369   :  { %v2057_v39 = vpop.eup %2056  ;;  %2066 = vrcp.f32 %v1326_v33 }
 0x36a   :  { %1438 = vst.msk [vmem:[%s2774_s8 + $0xd0] sm:$0xff] %vm1411_vm1, %v2057_v39  ;;  %2068 = vpow2.f32 %v1534_v35  ;;  %v1535_v40 = vmul.f32 -1.442695, %v1164_v36 }
 0x36b   :  { %v2059_v41 = vpop.eup %2058 }
 0x36c   :  { %v2061_v42 = vpop.eup %2060  ;;  %1439 = vst.msk [vmem:[%s2774_s8 + $0xd8] sm:$0xff] %vm1411_vm1, %v2059_v41  ;;  %2070 = vpow2.f32 %v1535_v40 }
 0x36d   :  { %v1327_v44 = vadd.f32 1.0, %v2061_v42  ;;  %v1168_v45 = vpop.f32.mrb[108].mxu0 }
 0x36e   :  { %v2063_v46 = vpop.eup %2062  ;;  %v1169_v47 = vadd.f32 %v2574_v10, %v1168_v45  ;;  %v1891_v48 = vpop.f32.mrb[109].mxu0 }
 0x36f   :  { %2072 = vrcp.f32 %v1327_v44  ;;  %v1328_v49 = vadd.f32 1.0, %v2063_v46  ;;  %v1171_v50 = vpop.f32.mrb[110].mxu0 }
 0x370   :  { %v1536_v51 = vmul.f32 -1.442695, %v1169_v47  ;;  %v1172_v52 = vadd.f32 %v2574_v10, %v1171_v50  ;;  %v1892_v53 = vpop.f32.mrb[111].mxu0 }
 0x371   :  { %v2065_v54 = vpop.eup %2064  ;;  %2074 = vrcp.f32 %v1328_v49 }
 0x372   :  { %1440 = vst.msk [vmem:[%s2774_s8 + $0xe0] sm:$0xff] %vm1411_vm1, %v2065_v54  ;;  %2076 = vpow2.f32 %v1536_v51  ;;  %v1537_v55 = vmul.f32 -1.442695, %v1172_v52 }
 0x373   :  { %v2067_v56 = vpop.eup %2066 }
 0x374   :  { %v2069_v57 = vpop.eup %2068  ;;  %1441 = vst.msk [vmem:[%s2774_s8 + $0xe8] sm:$0xff] %vm1411_vm1, %v2067_v56  ;;  %2078 = vpow2.f32 %v1537_v55 }
 0x375   :  { %v1329_v58 = vadd.f32 1.0, %v2069_v57  ;;  %v1176_v60 = vpop.f32.mrb[112].mxu0 }
 0x376   :  { %v2071_v62 = vpop.eup %2070  ;;  %v1177_v63 = vadd.f32 %v2574_v10, %v1176_v60  ;;  %v1895_v0 = vpop.f32.mrb[113].mxu0 }
 0x377   :  { %2080 = vrcp.f32 %v1329_v58  ;;  %v1330_v2 = vadd.f32 1.0, %v2071_v62  ;;  %v1179_v3 = vpop.f32.mrb[114].mxu0 }
 0x378   :  { %v1538_v4 = vmul.f32 -1.442695, %v1177_v63  ;;  %v1180_v5 = vadd.f32 %v2574_v10, %v1179_v3  ;;  %v1896_v6 = vpop.f32.mrb[115].mxu0 }
 0x379   :  { %v2073_v7 = vpop.eup %2072  ;;  %2082 = vrcp.f32 %v1330_v2 }
 0x37a   :  { %1442 = vst.msk [vmem:[%s2774_s8 + $0xf0] sm:$0xff] %vm1411_vm1, %v2073_v7  ;;  %2084 = vpow2.f32 %v1538_v4  ;;  %v1539_v8 = vmul.f32 -1.442695, %v1180_v5 }
 0x37b   :  { %v2075_v9 = vpop.eup %2074 }
 0x37c   :  { %v2077_v11 = vpop.eup %2076  ;;  %1443 = vst.msk [vmem:[%s2774_s8 + $0xf8] sm:$0xff] %vm1411_vm1, %v2075_v9  ;;  %2086 = vpow2.f32 %v1539_v8 }
 0x37d   :  { %v1331_v12 = vadd.f32 1.0, %v2077_v11 }
 0x37e   :  { %v2079_v10 = vpop.eup %2078 }
 0x37f   :  { %2088 = vrcp.f32 %v1331_v12  ;;  %v1332_v13 = vadd.f32 1.0, %v2079_v10 }
 0x381   :  { %v2081_v14 = vpop.eup %2080  ;;  %2090 = vrcp.f32 %v1332_v13 }
 0x382   :  { %1444 = vst.msk [vmem:[%s2774_s8 + $0x100] sm:$0xff] %vm1411_vm1, %v2081_v14 }
 0x383   :  { %v2083_v15 = vpop.eup %2082 }
 0x384   :  { %v2085_v16 = vpop.eup %2084  ;;  %1445 = vst.msk [vmem:[%s2774_s8 + $0x108] sm:$0xff] %vm1411_vm1, %v2083_v15 }
 0x385   :  { %v1333_v19 = vadd.f32 1.0, %v2085_v16 }
 0x386   :  { %v2087_v1 = vpop.eup %2086 }
 0x387   :  { %2092 = vrcp.f32 %v1333_v19  ;;  %v1334_v25 = vadd.f32 1.0, %v2087_v1 }
 0x389   :  { %v2089_v20 = vpop.eup %2088  ;;  %2094 = vrcp.f32 %v1334_v25 }
 0x38a   :  { %1446 = vst.msk [vmem:[%s2774_s8 + $0x110] sm:$0xff] %vm1411_vm1, %v2089_v20 }
 0x38b   :  { %v2091_v21 = vpop.eup %2090 }
 0x38c   :  { %1447 = vst.msk [vmem:[%s2774_s8 + $0x118] sm:$0xff] %vm1411_vm1, %v2091_v21 }
 0x391   :  { %v2093_v22 = vpop.eup %2092 }
 0x392   :  { %1448 = vst.msk [vmem:[%s2774_s8 + $0x120] sm:$0xff] %vm1411_vm1, %v2093_v22 }
 0x393   :  { %v2095_v23 = vpop.eup %2094 }
 0x394   :  { %1449 = vst.msk [vmem:[%s2774_s8 + $0x128] sm:$0xff] %vm1411_vm1, %v2095_v23 }
 0x395   :  { %1454 = vsyncpa [#allocation4], 1 }
 0x396   :  { %1455 = vsyncpa [#allocation6], 1 }

</bundles_post_ra>
